<compile_context>
chip_gen: v6e
topology: v6e:2x2x1
jax: 0.10.0
libtpu: 0.0.40
codegen_flags: <defaults>
</compile_context>

<pallas_src>
import functools

import numpy as np
import jax
import jax.numpy as jnp
from jax import lax
from jax.experimental import pallas as pl
from jax.experimental.pallas import tpu as pltpu

HID = 40            # GraphConv hidden width
FC1_OUT = 50        # fc11 / fc21 output width
LEAKY_SLOPE = 0.01  # torch LeakyReLU default
BN_EPS = 1e-5
HEAD_EPS = 1e-10


def _round_up(x, m):
    return (x + m - 1) // m * m


def _leaky(v):
    return jnp.where(v > 0, v, LEAKY_SLOPE * v)


# ---------------------------------------------------------------------------
# Fused kernel: adjacency build + both branches + per-graph norm + FC head
# ---------------------------------------------------------------------------
def gcn2c_kernel(x_ref, er_ref, ec_ref, w_ref, row_ref, hd_ref, fc2_ref, o_ref,
                 *, cin, ntot, n1tot, g):
    f32 = jnp.float32
    epad = er_ref.shape[1]

    # ---- 1. block-diagonal adjacency built in VMEM from the edge list ----
    #      A[i, j] = sum_{e : dst[e]=i, src[e]=j} w[e]   (PyG 'add' aggregation)
    dst = er_ref[1:2, :].astype(jnp.int32)                     # (1, E)
    src = ec_ref[:, 0:1].astype(jnp.int32)                     # (E, 1)
    ew = ec_ref[:, 2:3]                                        # (E, 1)
    node_i = lax.broadcasted_iota(jnp.int32, (ntot, epad), 0)
    node_j = lax.broadcasted_iota(jnp.int32, (epad, ntot), 1)
    s_dst = (node_i == dst).astype(f32)                        # (N, E)
    s_srcw = jnp.where(node_j == src, ew, 0.0)                 # (E, N)
    a = jnp.dot(s_dst, s_srcw, preferred_element_type=f32)     # (N, N)

    # ---- 2. three GraphConv layers, both branches in one stream ----
    x = x_ref[...]
    rows = row_ref[...]                                        # (N, 54)
    ones = jnp.ones((ntot, 1), f32)
    is_b1 = lax.broadcasted_iota(jnp.int32, (ntot, HID), 0) < n1tot
    is_b1c = lax.broadcasted_iota(jnp.int32, (ntot, 1), 0) < n1tot

    w2off = _round_up(2 * cin + 1, 8)
    w3off = w2off + _round_up(2 * HID + 1, 8)

    def conv(h, kin, off, ncols):
        # GraphConv(aggr='add'):  (A @ h) @ W_rel^T + h @ W_root^T + b
        # fused to ONE weight matmul via the augmented [W_rel; W_root; b]
        # slab, branch1 in lanes [0:ncols), branch2 in lanes [ncols:2*ncols).
        agg = jnp.dot(a, h, preferred_element_type=f32)
        z = jnp.concatenate([agg, h, ones], axis=-1)            # (N, 2k+1)
        return jnp.dot(z, w_ref[off:off + 2 * kin + 1, 0:2 * ncols],
                       preferred_element_type=f32)              # (N, 2*ncols)

    # layer 1 : C -> 40, LeakyReLU, folded eval-mode BatchNorm1d(num_nodes)
    hw = conv(x, cin, 0, HID)
    h = jnp.where(is_b1, hw[:, 0:HID], hw[:, HID:2 * HID])
    h = _leaky(h)
    h = h * rows[:, 0:1] + rows[:, 1:2]

    # layer 2 : 40 -> 40, LeakyReLU, folded BN
    hw = conv(h, HID, w2off, HID)
    h = jnp.where(is_b1, hw[:, 0:HID], hw[:, HID:2 * HID])
    h = _leaky(h)
    h = h * rows[:, 2:3] + rows[:, 3:4]

    # layer 3 : 40 -> 1, LeakyReLU
    hw = conv(h, HID, w3off, 1)
    h3 = jnp.where(is_b1c, hw[:, 0:1], hw[:, 1:2])
    h3 = _leaky(h3)                                             # (N, 1)

    # ---- 3. per-graph (h - mean)/(var + eps) fused with fc11 / fc21 ----
    pt = hd_ref[0:2 * g, 0:ntot]                                # (2G, N)
    misc = hd_ref[8:8 + 2 * g, :]
    colsum = misc[:, 0:FC1_OUT]
    fcb = misc[:, FC1_OUT:2 * FC1_OUT]
    inv_n = misc[:, 2 * FC1_OUT:2 * FC1_OUT + 1]
    inv_nm1 = misc[:, 2 * FC1_OUT + 1:2 * FC1_OUT + 2]

    fw = rows[:, 4:4 + FC1_OUT]                                 # per-row fc W
    m = jnp.concatenate([h3, h3 * fw, h3 * h3], axis=-1)        # (N, 52)
    srq = jnp.dot(pt, m, preferred_element_type=f32)            # (2G, 52)
    s = srq[:, 0:1]
    raw = srq[:, 1:1 + FC1_OUT]
    q = srq[:, 1 + FC1_OUT:2 + FC1_OUT]
    mean = s * inv_n
    var = (q - s * mean) * inv_nm1          # unbiased (N-1), matches torch.var
    o = (raw - mean * colsum) / (var + HEAD_EPS) + fcb          # exact division
    o = _leaky(o)                                               # (2G, 50)

    # ---- 4. fc2 on concat([branch1, branch2]) as ONE matmul ----
    oc = jnp.concatenate([o[0:g, :], o[g:2 * g, :]], axis=-1)   # (G, 100)
    fc2 = fc2_ref[...]
    o_ref[...] = (jnp.dot(oc, fc2[0:2 * FC1_OUT, :], preferred_element_type=f32)
                  + fc2[2 * FC1_OUT:2 * FC1_OUT + 1, :])


def _vmem_spec():
    return pl.BlockSpec(memory_space=pltpu.MemorySpace.VMEM)


def gcn_fused_call(x, er, ec, packed, *, cin, ntot, n1tot, g, out_ch):
    args = (x, er, ec, packed["w"], packed["rows"], packed["hd"], packed["fc2"])
    return pl.pallas_call(
        functools.partial(gcn2c_kernel, cin=cin, ntot=ntot, n1tot=n1tot, g=g),
        out_shape=jax.ShapeDtypeStruct((g, out_ch), jnp.float32),
        in_specs=[_vmem_spec() for _ in args],
        out_specs=_vmem_spec(),
    )(*args)


# ---------------------------------------------------------------------------
# Glue: edge slabs, parameter packing, jitted forward, pure-JAX reference
# ---------------------------------------------------------------------------
def _edge_slabs(ei1, ea1, ei2, ea2, n1tot):
    """Combined (branch2 offset) edge list in row- and column-major slabs."""
    src = jnp.concatenate([ei1[0], ei2[0] + n1tot]).astype(jnp.float32)
    dst = jnp.concatenate([ei1[1], ei2[1] + n1tot]).astype(jnp.float32)
    w = jnp.concatenate([ea1, ea2]).astype(jnp.float32)
    e = src.shape[0]
    epad = _round_up(e, 128)
    src = jnp.pad(src, (0, epad - e), constant_values=-1.0)
    dst = jnp.pad(dst, (0, epad - e), constant_values=-1.0)
    w = jnp.pad(w, (0, epad - e))
    er = jnp.concatenate([jnp.stack([src, dst, w], axis=0),
                          jnp.zeros((5, epad), jnp.float32)], axis=0)   # (8, E)
    return er, er.T                                                     # (E, 8)


@functools.partial(jax.jit, static_argnames=("g",))
def gcn_net_2channel_forward(x1, ei1, ea1, x2, ei2, ea2, packed, *, g):
    n1tot, cin = x1.shape
    ntot = n1tot + x2.shape[0]
    out_ch = packed["fc2"].shape[1]
    x = jnp.concatenate([x1, x2], axis=0)
    er, ec = _edge_slabs(ei1, ea1, ei2, ea2, n1tot)
    return gcn_fused_call(x, er, ec, packed, cin=cin, ntot=ntot,
                          n1tot=n1tot, g=g, out_ch=out_ch)


def init_raw_params(key, cin, n1, n2, out_ch):
    def branch(k, n):
        ks = jax.random.split(k, 13)
        w = lambda kk, s: 0.1 * jax.random.normal(kk, s, jnp.float32)

        def bn(kk):
            a, b, c, d = jax.random.split(kk, 4)
            return (1.0 + 0.1 * jax.random.normal(a, (n,), jnp.float32),   # gamma
                    0.1 * jax.random.normal(b, (n,), jnp.float32),         # beta
                    0.1 * jax.random.normal(c, (n,), jnp.float32),         # run-mean
                    1.0 + jax.random.uniform(d, (n,), jnp.float32))        # run-var

        return {"w1n": w(ks[0], (cin, HID)), "w1r": w(ks[1], (cin, HID)),
                "b1": w(ks[2], (HID,)),
                "w2n": w(ks[3], (HID, HID)), "w2r": w(ks[4], (HID, HID)),
                "b2": w(ks[5], (HID,)),
                "w3n": w(ks[6], (HID, 1)), "w3r": w(ks[7], (HID, 1)),
                "b3": w(ks[8], ()),
                "bn1": bn(ks[9]), "bn2": bn(ks[10]),
                "fcw": w(ks[11], (n, FC1_OUT)), "fcb": w(ks[12], (FC1_OUT,))}

    kb1, kb2, kw, kb = jax.random.split(key, 4)
    return {"b1": branch(kb1, n1), "b2": branch(kb2, n2),
            "head": {"fc2w": 0.1 * jax.random.normal(kw, (2 * FC1_OUT, out_ch),
                                                     jnp.float32),
                     "fc2b": 0.1 * jax.random.normal(kb, (out_ch,), jnp.float32)}}


def pack_params(raw, cin, n1, n2, g):
    """Pack everything into 4 lane-dense slabs (one-time, outside the fwd)."""
    b1, b2, head = raw["b1"], raw["b2"], raw["head"]
    n1tot, n2tot = g * n1, g * n2
    ntot = n1tot + n2tot
    assert 2 * g <= 8, "head slab layout assumes 2*num_graphs <= 8"

    def pad_rows(arr, rows):
        return jnp.pad(arr, ((0, rows - arr.shape[0]), (0, 0)))

    def layer_cols(bp, wn, wr, b):
        bias = jnp.reshape(bp[b], (1, -1))
        return jnp.concatenate([bp[wn], bp[wr], bias], axis=0)     # (2k+1, cols)

    # weight slab: per-layer augmented [W_rel; W_root; b] for both branches,
    # each section start aligned to an 8-row sublane tile.
    w1 = jnp.concatenate([layer_cols(b1, "w1n", "w1r", "b1"),
                          layer_cols(b2, "w1n", "w1r", "b1")], axis=1)  # (2C+1,80)
    w2 = jnp.concatenate([layer_cols(b1, "w2n", "w2r", "b2"),
                          layer_cols(b2, "w2n", "w2r", "b2")], axis=1)  # (81,80)
    w3 = jnp.concatenate([layer_cols(b1, "w3n", "w3r", "b3"),
                          layer_cols(b2, "w3n", "w3r", "b3")], axis=1)  # (81,2)
    w3 = jnp.pad(w3, ((0, 0), (0, 2 * HID - 2)))
    wslab = jnp.concatenate([pad_rows(w1, _round_up(2 * cin + 1, 8)),
                             pad_rows(w2, _round_up(2 * HID + 1, 8)),
                             pad_rows(w3, _round_up(2 * HID + 1, 8))], axis=0)

    # per-node slab: [bn1_scale, bn1_bias, bn2_scale, bn2_bias, fc weight row]
    def node_rows(bp):
        def fold(bn):
            gamma, beta, rmean, rvar = bn
            scale = gamma / jnp.sqrt(rvar + BN_EPS)
            return scale, beta - rmean * scale
        s1, o1 = fold(bp["bn1"])
        s2, o2 = fold(bp["bn2"])
        bn4 = jnp.tile(jnp.stack([s1, o1, s2, o2], axis=1), (g, 1))
        fw = jnp.tile(bp["fcw"], (g, 1))
        return jnp.concatenate([bn4, fw], axis=1)                   # (g*n, 54)

    rowslab = jnp.concatenate([node_rows(b1), node_rows(b2)], axis=0)

    # head slab: node->group selector + per-group [colsum | fc bias | 1/n | 1/(n-1)]
    hd_w = max(2 * FC1_OUT + 2, ntot)
    pt = jnp.zeros((2 * g, ntot), jnp.float32)
    pt = pt.at[0:g, 0:n1tot].set(
        jnp.repeat(jnp.eye(g, dtype=jnp.float32), n1, axis=1))
    pt = pt.at[g:2 * g, n1tot:ntot].set(
        jnp.repeat(jnp.eye(g, dtype=jnp.float32), n2, axis=1))

    def group_rows(bp, n):
        row = jnp.concatenate([jnp.sum(bp["fcw"], axis=0), bp["fcb"],
                               jnp.array([1.0 / n, 1.0 / (n - 1)], jnp.float32)])
        return jnp.tile(row[None, :], (g, 1))

    misc = jnp.concatenate([group_rows(b1, n1), group_rows(b2, n2)], axis=0)
    hdslab = jnp.zeros((16, hd_w), jnp.float32)
    hdslab = hdslab.at[0:2 * g, 0:ntot].set(pt)
    hdslab = hdslab.at[8:8 + 2 * g, 0:2 * FC1_OUT + 2].set(misc)

    fc2slab = jnp.concatenate([head["fc2w"], head["fc2b"][None, :]], axis=0)
    fc2slab = pad_rows(fc2slab, _round_up(fc2slab.shape[0], 8))

    return {"w": wslab, "rows": rowslab, "hd": hdslab, "fc2": fc2slab}


def reference_forward(x1, ei1, ea1, x2, ei2, ea2, raw, *, g, n1, n2):
    """Pure-JAX mirror of the torch module (eval mode) for validation."""
    dot = functools.partial(jnp.dot, precision=jax.lax.Precision.HIGHEST)

    def bn_eval(h, bn, n):
        gamma, beta, rmean, rvar = bn
        hh = h.reshape(g, n, h.shape[-1])
        hh = (hh - rmean[None, :, None]) / jnp.sqrt(rvar[None, :, None] + BN_EPS)
        hh = hh * gamma[None, :, None] + beta[None, :, None]
        return hh.reshape(g * n, h.shape[-1])

    def branch(x, ei, ea, p, n):
        nt = g * n
        a = jnp.zeros((nt, nt), jnp.float32).at[ei[1], ei[0]].add(ea)
        h = dot(dot(a, x), p["w1n"]) + dot(x, p["w1r"]) + p["b1"]
        h = bn_eval(_leaky(h), p["bn1"], n)
        h = dot(dot(a, h), p["w2n"]) + dot(h, p["w2r"]) + p["b2"]
        h = bn_eval(_leaky(h), p["bn2"], n)
        h = dot(dot(a, h), p["w3n"]) + dot(h, p["w3r"]) + p["b3"]
        h = _leaky(h).reshape(g, n)
        mean = jnp.mean(h, axis=1, keepdims=True)
        var = jnp.var(h, axis=1, keepdims=True, ddof=1)
        hn = (h - mean) / (var + HEAD_EPS)
        # dropout(p=0.5) is identity in eval mode
        return dot(hn, p["fcw"]) + p["fcb"]

    o1 = branch(x1, ei1, ea1, raw["b1"], n1)
    o2 = branch(x2, ei2, ea2, raw["b2"], n2)
    o = _leaky(jnp.concatenate([o1, o2], axis=-1))
    return dot(o, raw["head"]["fc2w"]) + raw["head"]["fc2b"]


def ring_edges(key, g, n):
    i = np.arange(n)
    src1 = np.concatenate([i, (i + 1) % n])
    dst1 = np.concatenate([(i + 1) % n, i])
    src = np.concatenate([src1 + k * n for k in range(g)])
    dst = np.concatenate([dst1 + k * n for k in range(g)])
    edge_index = jnp.asarray(np.stack([src, dst]), dtype=jnp.int32)
    edge_attr = jax.random.uniform(key, (edge_index.shape[1],), jnp.float32,
                                   0.5, 1.5)
    return edge_index, edge_attr


if __name__ == "__main__":
    G = 2            # num_graphs
    CIN = 4          # in_channels
    N1, N2 = 16, 12  # num_nodes = [16, 12]
    OUT = 3          # out_channels

    root = jax.random.PRNGKey(0)
    kx1, kx2, ke1, ke2, kp = jax.random.split(root, 5)

    x1 = jax.random.normal(kx1, (G * N1, CIN), dtype=jnp.float32)
    x2 = jax.random.normal(kx2, (G * N2, CIN), dtype=jnp.float32)
    ei1, ea1 = ring_edges(ke1, G, N1)
    ei2, ea2 = ring_edges(ke2, G, N2)

    raw = init_raw_params(kp, CIN, N1, N2, OUT)
    packed = pack_params(raw, CIN, N1, N2, G)

    out = gcn_net_2channel_forward(x1, ei1, ea1, x2, ei2, ea2, packed, g=G)
    out = jax.block_until_ready(out)
    assert out.shape == (G, OUT) and out.dtype == jnp.float32

    ref = reference_forward(x1, ei1, ea1, x2, ei2, ea2, raw, g=G, n1=N1, n2=N2)
    np.testing.assert_allclose(np.asarray(out), np.asarray(ref),
                               rtol=5e-2, atol=5e-2)
    print("KERNEL_OK")
</pallas_src>

<mosaic_0001>
module attributes {stable_mosaic.version = 11 : i64} {
  func.func @gcn2c_kernel(%arg0: memref<56x4xf32, #tpu.memory_space<vmem>>, %arg1: memref<8x128xf32, #tpu.memory_space<vmem>>, %arg2: memref<128x8xf32, #tpu.memory_space<vmem>>, %arg3: memref<192x80xf32, #tpu.memory_space<vmem>>, %arg4: memref<56x54xf32, #tpu.memory_space<vmem>>, %arg5: memref<16x102xf32, #tpu.memory_space<vmem>>, %arg6: memref<104x3xf32, #tpu.memory_space<vmem>>, %arg7: memref<2x3xf32, #tpu.memory_space<vmem>>) attributes {dimension_semantics = [], scalar_prefetch = 0 : i64, scratch_operands = 0 : i64, tpu.core_type = #tpu.core_type<tc>} {
    %c1 = arith.constant 1 : index
    %c0 = arith.constant 0 : index
    %0 = vector.load %arg1[%c1, %c0] : memref<8x128xf32, #tpu.memory_space<vmem>>, vector<1x128xf32>
    %1 = arith.fptosi %0 : vector<1x128xf32> to vector<1x128xi32>
    %c0_0 = arith.constant 0 : index
    %c0_1 = arith.constant 0 : index
    %2 = vector.load %arg2[%c0_0, %c0_1] : memref<128x8xf32, #tpu.memory_space<vmem>>, vector<128x1xf32>
    %3 = arith.fptosi %2 : vector<128x1xf32> to vector<128x1xi32>
    %c0_2 = arith.constant 0 : index
    %c2 = arith.constant 2 : index
    %4 = vector.load %arg2[%c0_2, %c2] : memref<128x8xf32, #tpu.memory_space<vmem>>, vector<128x1xf32>
    %5 = tpu.iota {dimensions = array<i32: 0>} : vector<56x128xi32>
    %6 = tpu.iota {dimensions = array<i32: 1>} : vector<128x56xi32>
    %7 = vector.broadcast %1 : vector<1x128xi32> to vector<56x128xi32>
    %8 = arith.cmpi eq, %5, %7 : vector<56x128xi32>
    %9 = arith.extui %8 : vector<56x128xi1> to vector<56x128xi32>
    %10 = arith.sitofp %9 : vector<56x128xi32> to vector<56x128xf32>
    %11 = vector.broadcast %3 : vector<128x1xi32> to vector<128x56xi32>
    %12 = arith.cmpi eq, %6, %11 : vector<128x56xi32>
    %cst = arith.constant 0.000000e+00 : f32
    %13 = vector.shape_cast %4 : vector<128x1xf32> to vector<128x1xf32>
    %14 = vector.broadcast %13 : vector<128x1xf32> to vector<128x56xf32>
    %15 = vector.broadcast %cst : f32 to vector<128x56xf32>
    %16 = arith.select %12, %14, %15 : vector<128x56xi1>, vector<128x56xf32>
    %cst_3 = arith.constant dense<0.000000e+00> : vector<56x56xf32>
    %17 = tpu.matmul %10, %16, %cst_3 {dimension_numbers = #tpu.dot_dimension_numbers<[1], [0], [0], [1], [0, 0, 1, 1], [], []>} : vector<56x128xf32>, vector<128x56xf32>, vector<56x56xf32> -> vector<56x56xf32>
    %c0_4 = arith.constant 0 : index
    %c0_5 = arith.constant 0 : index
    %18 = vector.load %arg0[%c0_4, %c0_5] : memref<56x4xf32, #tpu.memory_space<vmem>>, vector<56x4xf32>
    %c0_6 = arith.constant 0 : index
    %c0_7 = arith.constant 0 : index
    %19 = vector.load %arg4[%c0_6, %c0_7] : memref<56x54xf32, #tpu.memory_space<vmem>>, vector<56x54xf32>
    %cst_8 = arith.constant 1.000000e+00 : f32
    %20 = vector.broadcast %cst_8 : f32 to vector<56x1xf32>
    %21 = tpu.iota {dimensions = array<i32: 0>} : vector<56x40xi32>
    %c32_i32 = arith.constant 32 : i32
    %22 = vector.broadcast %c32_i32 : i32 to vector<56x40xi32>
    %23 = arith.cmpi slt, %21, %22 : vector<56x40xi32>
    %24 = tpu.iota {dimensions = array<i32: 0>} : vector<56x1xi32>
    %c32_i32_9 = arith.constant 32 : i32
    %25 = vector.broadcast %c32_i32_9 : i32 to vector<56x1xi32>
    %26 = arith.cmpi slt, %24, %25 : vector<56x1xi32>
    %cst_10 = arith.constant dense<0.000000e+00> : vector<56x4xf32>
    %27 = tpu.matmul %17, %18, %cst_10 {dimension_numbers = #tpu.dot_dimension_numbers<[1], [0], [0], [1], [0, 0, 1, 1], [], []>} : vector<56x56xf32>, vector<56x4xf32>, vector<56x4xf32> -> vector<56x4xf32>
    %28 = tpu.concatenate %27, %18, %20 in 1 : vector<56x4xf32>, vector<56x4xf32>, vector<56x1xf32> -> vector<56x9xf32>
    %c0_11 = arith.constant 0 : index
    %c0_12 = arith.constant 0 : index
    %29 = vector.load %arg3[%c0_11, %c0_12] : memref<192x80xf32, #tpu.memory_space<vmem>>, vector<9x80xf32>
    %cst_13 = arith.constant dense<0.000000e+00> : vector<56x80xf32>
    %30 = tpu.matmul %28, %29, %cst_13 {dimension_numbers = #tpu.dot_dimension_numbers<[1], [0], [0], [1], [0, 0, 1, 1], [], []>} : vector<56x9xf32>, vector<9x80xf32>, vector<56x80xf32> -> vector<56x80xf32>
    %31 = vector.extract_strided_slice %30 {offsets = [0, 0], sizes = [56, 40], strides = [1, 1]} : vector<56x80xf32> to vector<56x40xf32>
    %32 = vector.extract_strided_slice %30 {offsets = [0, 40], sizes = [56, 40], strides = [1, 1]} : vector<56x80xf32> to vector<56x40xf32>
    %33 = arith.select %23, %31, %32 : vector<56x40xi1>, vector<56x40xf32>
    %cst_14 = arith.constant 0.000000e+00 : f32
    %34 = vector.broadcast %cst_14 : f32 to vector<56x40xf32>
    %35 = arith.cmpf ogt, %33, %34 : vector<56x40xf32>
    %cst_15 = arith.constant 0.00999999977 : f32
    %36 = vector.broadcast %cst_15 : f32 to vector<56x40xf32>
    %37 = arith.mulf %36, %33 : vector<56x40xf32>
    %38 = arith.select %35, %33, %37 : vector<56x40xi1>, vector<56x40xf32>
    %39 = vector.extract_strided_slice %19 {offsets = [0, 0], sizes = [56, 1], strides = [1, 1]} : vector<56x54xf32> to vector<56x1xf32>
    %40 = vector.broadcast %39 : vector<56x1xf32> to vector<56x40xf32>
    %41 = arith.mulf %38, %40 : vector<56x40xf32>
    %42 = vector.extract_strided_slice %19 {offsets = [0, 1], sizes = [56, 1], strides = [1, 1]} : vector<56x54xf32> to vector<56x1xf32>
    %43 = vector.broadcast %42 : vector<56x1xf32> to vector<56x40xf32>
    %44 = arith.addf %41, %43 : vector<56x40xf32>
    %cst_16 = arith.constant dense<0.000000e+00> : vector<56x40xf32>
    %45 = tpu.matmul %17, %44, %cst_16 {dimension_numbers = #tpu.dot_dimension_numbers<[1], [0], [0], [1], [0, 0, 1, 1], [], []>} : vector<56x56xf32>, vector<56x40xf32>, vector<56x40xf32> -> vector<56x40xf32>
    %46 = tpu.concatenate %45, %44, %20 in 1 : vector<56x40xf32>, vector<56x40xf32>, vector<56x1xf32> -> vector<56x81xf32>
    %c16 = arith.constant 16 : index
    %c0_17 = arith.constant 0 : index
    %47 = vector.load %arg3[%c16, %c0_17] : memref<192x80xf32, #tpu.memory_space<vmem>>, vector<81x80xf32>
    %cst_18 = arith.constant dense<0.000000e+00> : vector<56x80xf32>
    %48 = tpu.matmul %46, %47, %cst_18 {dimension_numbers = #tpu.dot_dimension_numbers<[1], [0], [0], [1], [0, 0, 1, 1], [], []>} : vector<56x81xf32>, vector<81x80xf32>, vector<56x80xf32> -> vector<56x80xf32>
    %49 = vector.extract_strided_slice %48 {offsets = [0, 0], sizes = [56, 40], strides = [1, 1]} : vector<56x80xf32> to vector<56x40xf32>
    %50 = vector.extract_strided_slice %48 {offsets = [0, 40], sizes = [56, 40], strides = [1, 1]} : vector<56x80xf32> to vector<56x40xf32>
    %51 = arith.select %23, %49, %50 : vector<56x40xi1>, vector<56x40xf32>
    %cst_19 = arith.constant 0.000000e+00 : f32
    %52 = vector.broadcast %cst_19 : f32 to vector<56x40xf32>
    %53 = arith.cmpf ogt, %51, %52 : vector<56x40xf32>
    %cst_20 = arith.constant 0.00999999977 : f32
    %54 = vector.broadcast %cst_20 : f32 to vector<56x40xf32>
    %55 = arith.mulf %54, %51 : vector<56x40xf32>
    %56 = arith.select %53, %51, %55 : vector<56x40xi1>, vector<56x40xf32>
    %57 = vector.extract_strided_slice %19 {offsets = [0, 2], sizes = [56, 1], strides = [1, 1]} : vector<56x54xf32> to vector<56x1xf32>
    %58 = vector.broadcast %57 : vector<56x1xf32> to vector<56x40xf32>
    %59 = arith.mulf %56, %58 : vector<56x40xf32>
    %60 = vector.extract_strided_slice %19 {offsets = [0, 3], sizes = [56, 1], strides = [1, 1]} : vector<56x54xf32> to vector<56x1xf32>
    %61 = vector.broadcast %60 : vector<56x1xf32> to vector<56x40xf32>
    %62 = arith.addf %59, %61 : vector<56x40xf32>
    %cst_21 = arith.constant dense<0.000000e+00> : vector<56x40xf32>
    %63 = tpu.matmul %17, %62, %cst_21 {dimension_numbers = #tpu.dot_dimension_numbers<[1], [0], [0], [1], [0, 0, 1, 1], [], []>} : vector<56x56xf32>, vector<56x40xf32>, vector<56x40xf32> -> vector<56x40xf32>
    %64 = tpu.concatenate %63, %62, %20 in 1 : vector<56x40xf32>, vector<56x40xf32>, vector<56x1xf32> -> vector<56x81xf32>
    %c104 = arith.constant 104 : index
    %c0_22 = arith.constant 0 : index
    %65 = vector.load %arg3[%c104, %c0_22] : memref<192x80xf32, #tpu.memory_space<vmem>>, vector<81x2xf32>
    %cst_23 = arith.constant dense<0.000000e+00> : vector<56x2xf32>
    %66 = tpu.matmul %64, %65, %cst_23 {dimension_numbers = #tpu.dot_dimension_numbers<[1], [0], [0], [1], [0, 0, 1, 1], [], []>} : vector<56x81xf32>, vector<81x2xf32>, vector<56x2xf32> -> vector<56x2xf32>
    %67 = vector.extract_strided_slice %66 {offsets = [0, 0], sizes = [56, 1], strides = [1, 1]} : vector<56x2xf32> to vector<56x1xf32>
    %68 = vector.extract_strided_slice %66 {offsets = [0, 1], sizes = [56, 1], strides = [1, 1]} : vector<56x2xf32> to vector<56x1xf32>
    %69 = arith.select %26, %67, %68 : vector<56x1xi1>, vector<56x1xf32>
    %cst_24 = arith.constant 0.000000e+00 : f32
    %70 = vector.broadcast %cst_24 : f32 to vector<56x1xf32>
    %71 = arith.cmpf ogt, %69, %70 : vector<56x1xf32>
    %cst_25 = arith.constant 0.00999999977 : f32
    %72 = vector.broadcast %cst_25 : f32 to vector<56x1xf32>
    %73 = arith.mulf %72, %69 : vector<56x1xf32>
    %74 = arith.select %71, %69, %73 : vector<56x1xi1>, vector<56x1xf32>
    %c0_26 = arith.constant 0 : index
    %c0_27 = arith.constant 0 : index
    %75 = vector.load %arg5[%c0_26, %c0_27] : memref<16x102xf32, #tpu.memory_space<vmem>>, vector<4x56xf32>
    %c8 = arith.constant 8 : index
    %c0_28 = arith.constant 0 : index
    %76 = vector.load %arg5[%c8, %c0_28] : memref<16x102xf32, #tpu.memory_space<vmem>>, vector<4x102xf32>
    %77 = vector.extract_strided_slice %76 {offsets = [0, 0], sizes = [4, 50], strides = [1, 1]} : vector<4x102xf32> to vector<4x50xf32>
    %78 = vector.extract_strided_slice %76 {offsets = [0, 50], sizes = [4, 50], strides = [1, 1]} : vector<4x102xf32> to vector<4x50xf32>
    %79 = vector.extract_strided_slice %76 {offsets = [0, 100], sizes = [4, 1], strides = [1, 1]} : vector<4x102xf32> to vector<4x1xf32>
    %80 = vector.extract_strided_slice %76 {offsets = [0, 101], sizes = [4, 1], strides = [1, 1]} : vector<4x102xf32> to vector<4x1xf32>
    %81 = vector.extract_strided_slice %19 {offsets = [0, 4], sizes = [56, 50], strides = [1, 1]} : vector<56x54xf32> to vector<56x50xf32>
    %82 = vector.broadcast %74 : vector<56x1xf32> to vector<56x50xf32>
    %83 = arith.mulf %82, %81 : vector<56x50xf32>
    %84 = arith.mulf %74, %74 : vector<56x1xf32>
    %85 = tpu.concatenate %74, %83, %84 in 1 : vector<56x1xf32>, vector<56x50xf32>, vector<56x1xf32> -> vector<56x52xf32>
    %cst_29 = arith.constant dense<0.000000e+00> : vector<4x52xf32>
    %86 = tpu.matmul %75, %85, %cst_29 {dimension_numbers = #tpu.dot_dimension_numbers<[1], [0], [0], [1], [0, 0, 1, 1], [], []>} : vector<4x56xf32>, vector<56x52xf32>, vector<4x52xf32> -> vector<4x52xf32>
    %87 = vector.extract_strided_slice %86 {offsets = [0, 0], sizes = [4, 1], strides = [1, 1]} : vector<4x52xf32> to vector<4x1xf32>
    %88 = vector.extract_strided_slice %86 {offsets = [0, 1], sizes = [4, 50], strides = [1, 1]} : vector<4x52xf32> to vector<4x50xf32>
    %89 = vector.extract_strided_slice %86 {offsets = [0, 51], sizes = [4, 1], strides = [1, 1]} : vector<4x52xf32> to vector<4x1xf32>
    %90 = arith.mulf %87, %79 : vector<4x1xf32>
    %91 = arith.mulf %87, %90 : vector<4x1xf32>
    %92 = arith.subf %89, %91 : vector<4x1xf32>
    %93 = arith.mulf %92, %80 : vector<4x1xf32>
    %94 = vector.broadcast %90 : vector<4x1xf32> to vector<4x50xf32>
    %95 = arith.mulf %94, %77 : vector<4x50xf32>
    %96 = arith.subf %88, %95 : vector<4x50xf32>
    %cst_30 = arith.constant 1.000000e-10 : f32
    %97 = vector.broadcast %cst_30 : f32 to vector<4x1xf32>
    %98 = arith.addf %93, %97 : vector<4x1xf32>
    %99 = vector.broadcast %98 : vector<4x1xf32> to vector<4x50xf32>
    %100 = arith.divf %96, %99 : vector<4x50xf32>
    %101 = arith.addf %100, %78 : vector<4x50xf32>
    %cst_31 = arith.constant 0.000000e+00 : f32
    %102 = vector.broadcast %cst_31 : f32 to vector<4x50xf32>
    %103 = arith.cmpf ogt, %101, %102 : vector<4x50xf32>
    %cst_32 = arith.constant 0.00999999977 : f32
    %104 = vector.broadcast %cst_32 : f32 to vector<4x50xf32>
    %105 = arith.mulf %104, %101 : vector<4x50xf32>
    %106 = arith.select %103, %101, %105 : vector<4x50xi1>, vector<4x50xf32>
    %107 = vector.extract_strided_slice %106 {offsets = [0, 0], sizes = [2, 50], strides = [1, 1]} : vector<4x50xf32> to vector<2x50xf32>
    %108 = vector.extract_strided_slice %106 {offsets = [2, 0], sizes = [2, 50], strides = [1, 1]} : vector<4x50xf32> to vector<2x50xf32>
    %109 = tpu.concatenate %107, %108 in 1 : vector<2x50xf32>, vector<2x50xf32> -> vector<2x100xf32>
    %c0_33 = arith.constant 0 : index
    %c0_34 = arith.constant 0 : index
    %110 = vector.load %arg6[%c0_33, %c0_34] : memref<104x3xf32, #tpu.memory_space<vmem>>, vector<104x3xf32>
    %111 = vector.extract_strided_slice %110 {offsets = [0, 0], sizes = [100, 3], strides = [1, 1]} : vector<104x3xf32> to vector<100x3xf32>
    %cst_35 = arith.constant dense<0.000000e+00> : vector<2x3xf32>
    %112 = tpu.matmul %109, %111, %cst_35 {dimension_numbers = #tpu.dot_dimension_numbers<[1], [0], [0], [1], [0, 0, 1, 1], [], []>} : vector<2x100xf32>, vector<100x3xf32>, vector<2x3xf32> -> vector<2x3xf32>
    %113 = vector.extract_strided_slice %110 {offsets = [100, 0], sizes = [1, 3], strides = [1, 1]} : vector<104x3xf32> to vector<1x3xf32>
    %114 = vector.broadcast %113 : vector<1x3xf32> to vector<2x3xf32>
    %115 = arith.addf %112, %114 : vector<2x3xf32>
    %c0_36 = arith.constant 0 : index
    %c0_37 = arith.constant 0 : index
    %116 = vector.load %arg7[%c0_36, %c0_37] : memref<2x3xf32, #tpu.memory_space<vmem>>, vector<2x3xf32>
    tpu.vector_store %arg7[%c0_36, %c0_37], %115 {strides = array<i32>} : memref<2x3xf32, #tpu.memory_space<vmem>>, vector<2x3xf32>,
    return
  }
}

</mosaic_0001>

<bundles_post_ra>
// kernel: gcn_net_2channel_forward.1
= control target key start
LH: loop header
LB: loop body
LE: loop exit
PB: predicated region body
PF: predicated region fallthrough
CT: control target
= control target key end

     0   :  { %v2531_v3 = vmov 2   ;;  %v2532_v5 = vmov 0   ;;  %s3352_s0 = inlined_call_operand.vmem [shape: f32[56,4], index: 0, kind: input, shape index: {}]   ;;  %s3353_s1 = inlined_call_operand.vmem [shape: f32[8,128], index: 1, kind: input, shape index: {}]   ;;  %s3354_s2 = inlined_call_operand.vmem [shape: f32[128,8], index: 2, kind: input, shape index: {}]   ;;  %s3355_s3 = inlined_call_operand.vmem [shape: f32[192,80], index: 3, kind: input, shape index: {}]   ;;  %s3356_s4 = inlined_call_operand.vmem [shape: f32[56,54], index: 4, kind: input, shape index: {}]   ;;  %s3357_s5 = inlined_call_operand.vmem [shape: f32[16,102], index: 5, kind: input, shape index: {}]   ;;  %s3358_s6 = inlined_call_operand.vmem [shape: f32[104,3], index: 6, kind: input, shape index: {}]   ;;  %s3359_s7 = inlined_call_operand.hbm [shape: f32[2,3], index: 7, kind: output, shape index: {}]  }
   0x1   :  { %v43_v0 = vld [vmem:[%s3354_s2 + $0x70] sm:$0xff]  ;;  %v44_v1 = vld [vmem:[%s3354_s2 + $0x78] sm:$0xff]  ;;  %v42_v2 = vld [vmem:[%s3354_s2 + $0x68] sm:$0xff]  ;;  %2482 = vset.pattern.permute.xlu1 %v2531_v3  ;;  %2480 = vset.pattern.permute.xlu0 %v2532_v5 }
   0x2   :  { %v2456_v4 = vtrunc.f32 %v43_v0  ;;  %v2458_v6 = vtrunc.f32 %v44_v1  ;;  %232 = vperm.xlu1 %2482, %v43_v0   ;;  %v2454_v9 = vtrunc.f32 %v42_v2  ;;  %v41_v10 = vld [vmem:[%s3354_s2 + $0x60] sm:$0xff] }
   0x3   :  { %v2452_v12 = vtrunc.f32 %v41_v10 }
   0x4   :  { %v2457_v7 = vcvt.f32.s32 %v2456_v4  ;;  %v2459_v8 = vcvt.f32.s32 %v2458_v6  ;;  %v2455_v11 = vcvt.f32.s32 %v2454_v9 }
   0x6   :  { %142 = vperm.xlu0 %2480, %v2459_v8   ;;  %2483 = vset.pattern.permute.xlu1 %v2532_v5 }
   0x7   :  { %139 = vperm.xlu1 %2483, %v2457_v7  }
   0x8   :  { %12 = vsyncpa [#allocation3], 0  ;;  %v40_v13 = vld [vmem:[%s3354_s2 + $0x58] sm:$0xff]  ;;  %v2533_v14 = vmov 0.0   ;;  %v2453_v15 = vcvt.f32.s32 %v2452_v12  ;;  %v2614_v17 = vld [vmem:[%s3352_s0 + $0x30] sm:$0xff]  ;;  %vm2534_vm0 = vmmov 0   ;;  %v61_v61 = vlaneseq }
   0x9   :  { %2111 = vmatprep.subr.mxu0 %v2533_v14  ;;  %v2450_v16 = vtrunc.f32 %v40_v13  ;;  %2164 = vmatprep.subr.mxu1 %v2533_v14  ;;  %v39_v18 = vld [vmem:[%s3354_s2 + $0x50] sm:$0xff]  ;;  %v38_v21 = vld [vmem:[%s3354_s2 + $0x48] sm:$0xff]  ;;  %v37_v24 = vld [vmem:[%s3354_s2 + $0x40] sm:$0xff]  ;;  %s2538_s18 = smov 88   ;;  %s2539_s19 = smov 40  }
   0xa   :  { %2481 = vset.pattern.permute.xlu0 %v2531_v3  ;;  %2165 = vmatpush3.msra.mxu1 %v2614_v17  ;;  %v2448_v20 = vtrunc.f32 %v39_v18  ;;  %v2446_v23 = vtrunc.f32 %v38_v21  ;;  %v2444_v26 = vtrunc.f32 %v37_v24  ;;  %v36_v27 = vld [vmem:[%s3354_s2 + $0x38] sm:$0xff]  ;;  %v35_v30 = vld [vmem:[%s3354_s2 + $0x30] sm:$0xff]  ;;  %v34_v33 = vld [vmem:[%s3354_s2 + $0x28] sm:$0xff]  ;;  %v2695_v63 = vand.u32 127, %v61_v61  ;;  %s2542_s13 = smov 51   ;;  %s2543_s15 = smov 125  }
   0xb   :  { %237 = vperm.xlu0 %2481, %v44_v1   ;;  %136 = vperm.xlu1 %2483, %v2455_v11   ;;  %v2451_v19 = vcvt.f32.s32 %v2450_v16  ;;  %v2442_v29 = vtrunc.f32 %v36_v27  ;;  %v2440_v32 = vtrunc.f32 %v35_v30  ;;  %v2438_v35 = vtrunc.f32 %v34_v33  ;;  %v33_v36 = vld [vmem:[%s3354_s2 + $0x20] sm:$0xff]  ;;  %v32_v39 = vld [vmem:[%s3354_s2 + $0x18] sm:$0xff]  ;;  %v31_v42 = vld [vmem:[%s3354_s2 + $0x10] sm:$0xff]  ;;  %s2544_s29 = smov 28   ;;  %s2545_s8 = smov 78  }
   0xc   :  { %2166 = vmatprep.subr.mxu1 %v2533_v14  ;;  %v2449_v22 = vcvt.f32.s32 %v2448_v20  ;;  %v2447_v25 = vcvt.f32.s32 %v2446_v23  ;;  %v2445_v28 = vcvt.f32.s32 %v2444_v26  ;;  %v2436_v38 = vtrunc.f32 %v33_v36  ;;  %v30_v45 = vld [vmem:[%s3354_s2 + $0x8] sm:$0xff]  ;;  %v29_v48 = vld [vmem:[%s3354_s2] sm:$0xff]  ;;  %2143 = vmatprep.mubr.msk.f32.mxu0 %vm2534_vm0, %v2533_v14  ;;  %s2535_s2 = smov 4   ;;  %v358_v53 = vld [vmem:[%s3352_s0 + $0x10] sm:$0xff]  ;;  %s2548_s9 = smov 79  }
   0xd   :  { %v2443_v31 = vcvt.f32.s32 %v2442_v29  ;;  %v2441_v34 = vcvt.f32.s32 %v2440_v32  ;;  %v2439_v37 = vcvt.f32.s32 %v2438_v35  ;;  %v2434_v41 = vtrunc.f32 %v32_v39  ;;  %2178 = vmatprep.mubr.msk.f32.mxu1 %vm2534_vm0, %v2533_v14  ;;  %v356_v52 = vld [vmem:[%s3352_s0] sm:$0xff]  ;;  %v2670_v55 = vld [vmem:[%s3356_s4 + $0x28] sm:$0xff]  ;;  %v359_v59 = vld [vmem:[%s3352_s0 + $0x18] sm:$0xff] }
   0xe   :  { %v2437_v40 = vcvt.f32.s32 %v2436_v38  ;;  %v2432_v44 = vtrunc.f32 %v31_v42  ;;  %v2430_v47 = vtrunc.f32 %v30_v45  ;;  %v2428_v50 = vtrunc.f32 %v29_v48  ;;  %v360_v54 = vld [vmem:[%s3352_s0 + $0x20] sm:$0xff]  ;;  %v361_v57 = vld [vmem:[%s3352_s0 + $0x28] sm:$0xff] }
   0xf   :  { %227 = vperm.xlu0 %2481, %v42_v2   ;;  %133 = vperm.xlu1 %2483, %v2453_v15   ;;  %v2435_v43 = vcvt.f32.s32 %v2434_v41  ;;  %v2676_v56 = vld [vmem:[%s3356_s4 + $0x20] sm:$0xff]  ;;  %v357_v58 = vld [vmem:[%s3352_s0 + $0x8] sm:$0xff] }
  0x10   :  { %v2433_v46 = vcvt.f32.s32 %v2432_v44  ;;  %v2431_v49 = vcvt.f32.s32 %v2430_v47  ;;  %v2429_v51 = vcvt.f32.s32 %v2428_v50  ;;  %2167 = vmatpush3.msra.mxu1 %v361_v57 }
  0x11   :  { %2168 = vmatprep.subr.mxu1 %v2533_v14 }
  0x12   :  { %2169 = vmatpush3.msra.mxu1 %v360_v54 }
  0x13   :  { %222 = vperm.xlu0 %2481, %v41_v10   ;;  %130 = vperm.xlu1 %2483, %v2451_v19  }
  0x14   :  { %2170 = vmatprep.subr.mxu1 %v2533_v14 }
  0x15   :  { %2171 = vmatpush3.msra.mxu1 %v359_v59 }
  0x16   :  { %2172 = vmatprep.subr.mxu1 %v2533_v14 }
  0x17   :  { %217 = vperm.xlu0 %2481, %v40_v13   ;;  %127 = vperm.xlu1 %2483, %v2449_v22  }
  0x18   :  { %2173 = vmatpush3.msra.mxu1 %v358_v53 }
  0x19   :  { %2174 = vmatprep.subr.mxu1 %v2533_v14 }
  0x1a   :  { %2175 = vmatpush3.msra.mxu1 %v357_v58 }
  0x1b   :  { %212 = vperm.xlu0 %2481, %v39_v18   ;;  %124 = vperm.xlu1 %2483, %v2447_v25   ;;  %v27_v25 = vld [vmem:[%s3353_s1 + $0x1] sm:$0x1] }
  0x1c   :  { %2176 = vmatprep.subr.mxu1 %v2533_v14 }
  0x1d   :  { %2177 = vmatpush3.msra.mxu1 %v356_v52 }
  0x1e   :  { %2199 = vmatprep.subr.mxu1 %v2533_v14 }
  0x1f   :  { %207 = vperm.xlu0 %2481, %v38_v21   ;;  %121 = vperm.xlu1 %2483, %v2445_v28   ;;  %v2725_v28 = vshrl.u32 %v61_v61, 7 }
  0x21   :  { %v73_v32 = vsub.s32 0, %v2725_v28  ;;  %v63_v38 = vadd.s32 8, %v2725_v28  ;;  %v64_v41 = vadd.s32 16, %v2725_v28  ;;  %v67_v44 = vadd.s32 40, %v2725_v28 }
  0x23   :  { %202 = vperm.xlu0 %2481, %v37_v24   ;;  %118 = vperm.xlu1 %2483, %v2443_v31  }
  0x27   :  { %197 = vperm.xlu0 %2481, %v36_v27   ;;  %115 = vperm.xlu1 %2483, %v2441_v34   ;;  %v2426_v27 = vtrunc.f32 %v27_v25 }
  0x29   :  { %v2427_v31 = vcvt.f32.s32 %v2426_v27 }
  0x2b   :  { %192 = vperm.xlu0 %2481, %v35_v30   ;;  %112 = vperm.xlu1 %2483, %v2439_v37   ;;  %v74_v35 = vrot.slane %v2427_v31, %v73_v32 }
  0x2f   :  { %187 = vperm.xlu0 %2481, %v34_v33   ;;  %109 = vperm.xlu1 %2483, %v2437_v40   ;;  %v2536_v40 = vmov 1.0  }
  0x33   :  { %182 = vperm.xlu0 %2481, %v33_v36   ;;  %106 = vperm.xlu1 %2483, %v2435_v43   ;;  %v66_v43 = vadd.s32 32, %v2725_v28 }
  0x37   :  { %177 = vperm.xlu0 %2481, %v32_v39   ;;  %103 = vperm.xlu1 %2483, %v2433_v46   ;;  %v544_v46 = vld [vmem:[%s3355_s3 + $0x8] sm:$0x1] }
  0x3b   :  { %172 = vperm.xlu0 %2481, %v31_v42   ;;  %100 = vperm.xlu1 %2483, %v2431_v49   ;;  %v65_v42 = vadd.s32 24, %v2725_v28 }
  0x3f   :  { %167 = vperm.xlu0 %2481, %v30_v45   ;;  %97 = vperm.xlu1 %2483, %v2429_v51   ;;  %v68_v45 = vadd.s32 48, %v2725_v28 }
  0x43   :  { %162 = vperm.xlu0 %2481, %v29_v48   ;;  %506 = vrot.lane.b32.xlu1 %v356_v52, %s2535_s2 }
  0x47   :  { %2484 = vset.pattern.permute.xlu0 %v2532_v5  ;;  %510 = vrot.lane.b32.xlu1 %v358_v53, %s2535_s2 }
  0x48   :  { %508 = vrot.lane.b32.xlu0 %v357_v58, %s2535_s2 }
  0x4b   :  { %514 = vrot.lane.b32.xlu1 %v360_v54, %s2535_s2 }
  0x4c   :  { %512 = vrot.lane.b32.xlu0 %v359_v59, %s2535_s2 }
  0x4f   :  { %518 = vrot.lane.b32.xlu1 %v2614_v17, %s2535_s2 }
  0x50   :  { %516 = vrot.lane.b32.xlu0 %v361_v57, %s2535_s2 }
  0x53   :  { %754 = vperm.xlu1 %2483, %v2670_v55  }
  0x57   :  { %749 = vperm.xlu1 %2483, %v2676_v56  }
  0x7d   :  { %v233_v60 = vpop.permute.xlu1 %232 }
  0x81   :  { %v143_v62 = vpop.permute.xlu0 %142 }
  0x82   :  { %v140_v0 = vpop.permute.xlu1 %139  ;;  %vm159_vm1 = vcmp.eq.s32.totalorder %v2695_v63, %v143_v62 }
  0x83   :  { %vm158_vm2 = vcmp.eq.s32.totalorder %v2695_v63, %v140_v0  ;;  %v2811_v0 = vld [vmem:[%s3356_s4 + $0x30] sm:$0xff] }
  0x84   :  { %759 = vperm.xlu0 %2484, %v2811_v0  }
  0x86   :  { %v238_v1 = vpop.permute.xlu0 %237  ;;  %v137_v2 = vpop.permute.xlu1 %136 }
  0x87   :  { %2112 = vmatpush3.msk.msra.mxu0 %vm159_vm1, %v238_v1  ;;  %vm157_vm3 = vcmp.eq.s32.totalorder %v2695_v63, %v137_v2  ;;  %vm75_vm1 = vcmp.eq.s32.totalorder %v2725_v28, %v74_v35  ;;  %v2537_v1 = vmov 1   ;;  %v2817_v2 = vld [vmem:[%s3356_s4 + $0x18] sm:$0xff] }
  0x88   :  { %2113 = vmatprep.subr.mxu0 %v2533_v14  ;;  %2486 = vset.pattern.permute.xlu1 %v2537_v1 }
  0x89   :  { %2114 = vmatpush3.msk.msra.mxu0 %vm158_vm2, %v233_v60  ;;  %786 = vperm.xlu1 %2486, %v2676_v56  }
  0x8a   :  { %2115 = vmatprep.subr.mxu0 %v2533_v14  ;;  %v228_v4 = vpop.permute.xlu0 %227  ;;  %v134_v6 = vpop.permute.xlu1 %133  ;;  %744 = vperm.xlu0 %2484, %v2817_v2  }
  0x8b   :  { %2116 = vmatpush3.msk.msra.mxu0 %vm157_vm3, %v228_v4  ;;  %vm156_vm4 = vcmp.eq.s32.totalorder %v2695_v63, %v134_v6  ;;  %vm76_vm3 = vcmp.eq.s32.totalorder %v63_v38, %v74_v35  ;;  %v2823_v4 = vld [vmem:[%s3356_s4 + $0x10] sm:$0xff]  ;;  %v2831_v6 = vld [vmem:[%s3356_s4 + $0x8] sm:$0xff] }
  0x8c   :  { %2117 = vmatprep.subr.mxu0 %v2533_v14 }
  0x8d   :  { %2487 = vset.pattern.permute.xlu1 %v2532_v5 }
  0x8e   :  { %v223_v7 = vpop.permute.xlu0 %222  ;;  %v131_v8 = vpop.permute.xlu1 %130  ;;  %739 = vperm.xlu1 %2487, %v2823_v4   ;;  %2485 = vset.pattern.permute.xlu0 %v2537_v1 }
  0x8f   :  { %2118 = vmatpush3.msk.msra.mxu0 %vm156_vm4, %v223_v7  ;;  %vm155_vm5 = vcmp.eq.s32.totalorder %v2695_v63, %v131_v8  ;;  %vm77_vm4 = vcmp.eq.s32.totalorder %v64_v41, %v74_v35  ;;  %794 = vperm.xlu0 %2485, %v2811_v0   ;;  %v2840_v7 = vld [vmem:[%s3356_s4] sm:$0xff] }
  0x90   :  { %2119 = vmatprep.subr.mxu0 %v2533_v14 }
  0x92   :  { %v218_v9 = vpop.permute.xlu0 %217  ;;  %v128_v10 = vpop.permute.xlu1 %127  ;;  %734 = vperm.xlu1 %2487, %v2831_v6  }
  0x93   :  { %2120 = vmatpush3.msk.msra.mxu0 %vm155_vm5, %v218_v9  ;;  %vm154_vm6 = vcmp.eq.s32.totalorder %v2695_v63, %v128_v10  ;;  %vm78_vm5 = vcmp.eq.s32.totalorder %v65_v42, %v74_v35  ;;  %790 = vperm.xlu0 %2485, %v2670_v55  }
  0x94   :  { %2121 = vmatprep.subr.mxu0 %v2533_v14 }
  0x96   :  { %v213_v11 = vpop.permute.xlu0 %212  ;;  %v125_v12 = vpop.permute.xlu1 %124  ;;  %2488 = vset.pattern.permute.xlu1 %v2537_v1 }
  0x97   :  { %2122 = vmatpush3.msk.msra.mxu0 %vm154_vm6, %v213_v11  ;;  %vm153_vm7 = vcmp.eq.s32.totalorder %v2695_v63, %v125_v12  ;;  %vm79_vm6 = vcmp.eq.s32.totalorder %v66_v43, %v74_v35  ;;  %782 = vperm.xlu0 %2485, %v2817_v2  }
  0x98   :  { %2123 = vmatprep.subr.mxu0 %v2533_v14 }
  0x9a   :  { %v208_v13 = vpop.permute.xlu0 %207  ;;  %v122_v15 = vpop.permute.xlu1 %121 }
  0x9b   :  { %2124 = vmatpush3.msk.msra.mxu0 %vm153_vm7, %v208_v13  ;;  %vm152_vm8 = vcmp.eq.s32.totalorder %v2695_v63, %v122_v15  ;;  %vm80_vm7 = vcmp.eq.s32.totalorder %v67_v44, %v74_v35  ;;  %2489 = vset.pattern.permute.xlu0 %v2532_v5 }
  0x9c   :  { %2125 = vmatprep.subr.mxu0 %v2533_v14  ;;  %729 = vperm.xlu0 %2489, %v2840_v7  }
  0x9e   :  { %v203_v16 = vpop.permute.xlu0 %202  ;;  %v119_v17 = vpop.permute.xlu1 %118 }
  0x9f   :  { %2126 = vmatpush3.msk.msra.mxu0 %vm152_vm8, %v203_v16  ;;  %vm151_vm9 = vcmp.eq.s32.totalorder %v2695_v63, %v119_v17  ;;  %vm81_vm8 = vcmp.eq.s32.totalorder %v68_v45, %v74_v35 }
  0xa0   :  { %2127 = vmatprep.subr.mxu0 %v2533_v14  ;;  %2491 = vset.pattern.permute.xlu0 %v2531_v3 }
  0xa2   :  { %v198_v18 = vpop.permute.xlu0 %197  ;;  %v116_v19 = vpop.permute.xlu1 %115 }
  0xa3   :  { %2128 = vmatpush3.msk.msra.mxu0 %vm151_vm9, %v198_v18  ;;  %vm150_vm10 = vcmp.eq.s32.totalorder %v2695_v63, %v116_v19  ;;  %vm377_vm9 = vcmask 457728  }
  0xa4   :  { %2129 = vmatprep.subr.mxu0 %v2533_v14 }
  0xa6   :  { %v193_v20 = vpop.permute.xlu0 %192  ;;  %v113_v21 = vpop.permute.xlu1 %112 }
  0xa7   :  { %2130 = vmatpush3.msk.msra.mxu0 %vm150_vm10, %v193_v20  ;;  %vm149_vm11 = vcmp.eq.s32.totalorder %v2695_v63, %v113_v21  ;;  %vm567_vm10 = vcmask 1040384  }
  0xa8   :  { %2131 = vmatprep.subr.mxu0 %v2533_v14 }
  0xaa   :  { %v188_v22 = vpop.permute.xlu0 %187  ;;  %v110_v23 = vpop.permute.xlu1 %109 }
  0xab   :  { %2132 = vmatpush3.msk.msra.mxu0 %vm149_vm11, %v188_v22  ;;  %vm148_vm12 = vcmp.eq.s32.totalorder %v2695_v63, %v110_v23  ;;  %vm527_vm11 = vcmask 31744  }
  0xac   :  { %2133 = vmatprep.subr.mxu0 %v2533_v14 }
  0xae   :  { %v183_v24 = vpop.permute.xlu0 %182  ;;  %v107_v26 = vpop.permute.xlu1 %106 }
  0xaf   :  { %2134 = vmatpush3.msk.msra.mxu0 %vm148_vm12, %v183_v24  ;;  %vm147_vm13 = vcmp.eq.s32.totalorder %v2695_v63, %v107_v26  ;;  %vm535_vm12 = vcmask 64512  }
  0xb0   :  { %2135 = vmatprep.subr.mxu0 %v2533_v14 }
  0xb2   :  { %v178_v29 = vpop.permute.xlu0 %177  ;;  %v104_v30 = vpop.permute.xlu1 %103 }
  0xb3   :  { %2136 = vmatpush3.msk.msra.mxu0 %vm147_vm13, %v178_v29  ;;  %vm146_vm14 = vcmp.eq.s32.totalorder %v2695_v63, %v104_v30  ;;  %vm545_vm13 = vcmask 72704  }
  0xb4   :  { %2137 = vmatprep.subr.mxu0 %v2533_v14 }
  0xb6   :  { %v173_v33 = vpop.permute.xlu0 %172  ;;  %v101_v34 = vpop.permute.xlu1 %100 }
  0xb7   :  { %2138 = vmatpush3.msk.msra.mxu0 %vm146_vm14, %v173_v33  ;;  %vm145_vm15 = vcmp.eq.s32.totalorder %v2695_v63, %v101_v34 }
  0xb8   :  { %2139 = vmatprep.subr.mxu0 %v2533_v14 }
  0xba   :  { %v168_v36 = vpop.permute.xlu0 %167  ;;  %v98_v37 = vpop.permute.xlu1 %97 }
  0xbb   :  { %2140 = vmatpush3.msk.msra.mxu0 %vm145_vm15, %v168_v36  ;;  %vm144_vm2 = vcmp.eq.s32.totalorder %v2695_v63, %v98_v37  ;;  %v543_v63 = vld [vmem:[%s3355_s3] sm:$0xff] }
  0xbc   :  { %2141 = vmatprep.subr.mxu0 %v2533_v14 }
  0xbe   :  { %v163_v39 = vpop.permute.xlu0 %162  ;;  %v507_v8 = vpop.permute.xlu1 %506 }
  0xbf   :  { %2142 = vmatpush3.msk.msra.mxu0 %vm144_vm2, %v163_v39 }
  0xc0   :  { %2144 = vmatmul.mubr.msk.f32.vlgmr.msra.gmra.mxu0 %vm75_vm1, %v2536_v40  ;;  %2224 = vmatprep.subr.mxu0 %v2533_v14 }
  0xc1   :  { %2146 = vmatprep.mubr.msk.f32.mxu0 %vm2534_vm0, %v2533_v14 }
  0xc2   :  { %v509_v13 = vpop.permute.xlu0 %508  ;;  %v511_v19 = vpop.permute.xlu1 %510 }
  0xc4   :  { %2147 = vmatmul.mubr.msk.f32.gmra.mxu0 %vm76_vm3, %v2536_v40 }
  0xc5   :  { %2149 = vmatprep.mubr.msk.f32.mxu0 %vm2534_vm0, %v2533_v14 }
  0xc6   :  { %v513_v24 = vpop.permute.xlu0 %512  ;;  %v515_v30 = vpop.permute.xlu1 %514 }
  0xc8   :  { %2150 = vmatmul.mubr.msk.f32.gmra.mxu0 %vm77_vm4, %v2536_v40 }
  0xc9   :  { %2152 = vmatprep.mubr.msk.f32.mxu0 %vm2534_vm0, %v2533_v14 }
  0xca   :  { %v517_v35 = vpop.permute.xlu0 %516 }
  0xcc   :  { %2153 = vmatmul.mubr.msk.f32.gmra.mxu0 %vm78_vm5, %v2536_v40 }
  0xcd   :  { %2155 = vmatprep.mubr.msk.f32.mxu0 %vm2534_vm0, %v2533_v14 }
  0xd0   :  { %2156 = vmatmul.mubr.msk.f32.gmra.mxu0 %vm79_vm6, %v2536_v40  ;;  %vm932_vm6 = vcmask 326656  }
  0xd1   :  { %2158 = vmatprep.mubr.msk.f32.mxu0 %vm2534_vm0, %v2533_v14 }
  0xd4   :  { %2159 = vmatmul.mubr.msk.f32.gmra.mxu0 %vm80_vm7, %v2536_v40  ;;  %vm940_vm7 = vcmask 654336  }
  0xd5   :  { %2161 = vmatprep.mubr.msk.f32.mxu0 %vm2534_vm0, %v2533_v14 }
  0xd8   :  { %2162 = vmatmul.mubr.msk.f32.gmra.mxu0 %vm81_vm8, %v2536_v40  ;;  %v519_v40 = vpop.permute.xlu1 %518  ;;  %vm959_vm8 = vcmask 662528  }
  0xd9   :  { %2238 = vmatprep.mubr.msk.f32.mxu0 %vm2534_vm0, %v2533_v14 }
 0x180   :  { %v2760_v47 = vpop.f32.mrf.mxu0 }
 0x181   :  { %2179 = vmatmul.mubr.msk.f32.vlgmr.msra.gmra.mxu1 %vm377_vm9, %v2760_v47 }
 0x182   :  { %v2145_v48 = vpop.f32.mrf.mxu0  ;;  %2181 = vmatprep.mubr.msk.f32.mxu1 %vm2534_vm0, %v2533_v14  ;;  %2200 = vmatpush3.msk.msra.mxu1 %vm567_vm10, %v544_v46 }
 0x183   :  { %2201 = vmatprep.subr.mxu1 %v2533_v14 }
 0x184   :  { %v2768_v49 = vpop.f32.mrf.mxu0  ;;  %2202 = vmatpush3.msra.mxu1 %v543_v63 }
 0x185   :  { %2182 = vmatmul.mubr.msk.f32.gmra.mxu1 %vm377_vm9, %v2768_v49  ;;  %2259 = vmatprep.subr.mxu1 %v2533_v14 }
 0x186   :  { %v2148_v50 = vpop.f32.mrf.mxu0  ;;  %2184 = vmatprep.mubr.msk.f32.mxu1 %vm2534_vm0, %v2533_v14 }
 0x188   :  { %v2774_v51 = vpop.f32.mrf.mxu0 }
 0x189   :  { %2185 = vmatmul.mubr.msk.f32.gmra.mxu1 %vm377_vm9, %v2774_v51 }
 0x18a   :  { %v2151_v52 = vpop.f32.mrf.mxu0  ;;  %2187 = vmatprep.mubr.msk.f32.mxu1 %vm2534_vm0, %v2533_v14 }
 0x18c   :  { %v2780_v53 = vpop.f32.mrf.mxu0 }
 0x18d   :  { %2188 = vmatmul.mubr.msk.f32.gmra.mxu1 %vm377_vm9, %v2780_v53 }
 0x18e   :  { %v2154_v54 = vpop.f32.mrf.mxu0  ;;  %2190 = vmatprep.mubr.msk.f32.mxu1 %vm2534_vm0, %v2533_v14 }
 0x190   :  { %v2786_v57 = vpop.f32.mrf.mxu0 }
 0x191   :  { %2191 = vmatmul.mubr.msk.f32.gmra.mxu1 %vm377_vm9, %v2786_v57 }
 0x192   :  { %v2157_v58 = vpop.f32.mrf.mxu0  ;;  %2193 = vmatprep.mubr.msk.f32.mxu1 %vm2534_vm0, %v2533_v14 }
 0x194   :  { %v2792_v59 = vpop.f32.mrf.mxu0 }
 0x195   :  { %2194 = vmatmul.mubr.msk.f32.gmra.mxu1 %vm377_vm9, %v2792_v59 }
 0x196   :  { %v2160_v60 = vpop.f32.mrf.mxu0  ;;  %2196 = vmatprep.mubr.msk.f32.mxu1 %vm2534_vm0, %v2533_v14 }
 0x198   :  { %v2798_v61 = vpop.f32.mrf.mxu0 }
 0x199   :  { %2197 = vmatmul.mubr.msk.f32.gmra.mxu1 %vm377_vm9, %v2798_v61 }
 0x19a   :  { %v2163_v62 = vpop.f32.mrf.mxu0  ;;  %2203 = vmatprep.mubr.msk.f32.mxu1 %vm2534_vm0, %v2533_v14 }
 0x241   :  { %v465_v9 = vpop.f32.mrf.mxu1 }
 0x242   :  { %v528_v10 = vsel %vm527_vm11, %v465_v9, %v507_v8 }
 0x243   :  { %v536_v11 = vsel %vm535_vm12, %v528_v10, 1.0  ;;  %v2180_v12 = vpop.f32.mrf.mxu1 }
 0x244   :  { %2204 = vmatmul.mubr.msk.f32.vlgmr.msra.gmra.mxu1 %vm545_vm13, %v536_v11  ;;  %v755_v11 = vpop.permute.xlu1 %754 }
 0x245   :  { %v470_v15 = vpop.f32.mrf.mxu1  ;;  %2206 = vmatprep.mubr.msk.f32.mxu1 %vm2534_vm0, %v2533_v14 }
 0x246   :  { %v529_v16 = vsel %vm527_vm11, %v470_v15, %v509_v13 }
 0x247   :  { %v537_v17 = vsel %vm535_vm12, %v529_v16, 1.0  ;;  %v2183_v18 = vpop.f32.mrf.mxu1  ;;  %v760_v16 = vpop.permute.xlu0 %759 }
 0x248   :  { %2207 = vmatmul.mubr.msk.f32.gmra.mxu1 %vm545_vm13, %v537_v17  ;;  %v750_v12 = vpop.permute.xlu1 %749 }
 0x249   :  { %v475_v20 = vpop.f32.mrf.mxu1  ;;  %2209 = vmatprep.mubr.msk.f32.mxu1 %vm2534_vm0, %v2533_v14 }
 0x24a   :  { %v530_v21 = vsel %vm527_vm11, %v475_v20, %v511_v19 }
 0x24b   :  { %v538_v22 = vsel %vm535_vm12, %v530_v21, 1.0  ;;  %v2186_v23 = vpop.f32.mrf.mxu1  ;;  %v745_v19 = vpop.permute.xlu0 %744 }
 0x24c   :  { %2210 = vmatmul.mubr.msk.f32.gmra.mxu1 %vm545_vm13, %v538_v22  ;;  %v787_v13 = vpop.permute.xlu1 %786 }
 0x24d   :  { %v480_v25 = vpop.f32.mrf.mxu1  ;;  %2212 = vmatprep.mubr.msk.f32.mxu1 %vm2534_vm0, %v2533_v14 }
 0x24e   :  { %v531_v26 = vsel %vm527_vm11, %v480_v25, %v513_v24 }
 0x24f   :  { %v539_v27 = vsel %vm535_vm12, %v531_v26, 1.0  ;;  %v2189_v29 = vpop.f32.mrf.mxu1  ;;  %v795_v22 = vpop.permute.xlu0 %794 }
 0x250   :  { %2213 = vmatmul.mubr.msk.f32.gmra.mxu1 %vm545_vm13, %v539_v27  ;;  %v740_v15 = vpop.permute.xlu1 %739 }
 0x251   :  { %v485_v31 = vpop.f32.mrf.mxu1  ;;  %2215 = vmatprep.mubr.msk.f32.mxu1 %vm2534_vm0, %v2533_v14 }
 0x252   :  { %v532_v32 = vsel %vm527_vm11, %v485_v31, %v515_v30 }
 0x253   :  { %v540_v33 = vsel %vm535_vm12, %v532_v32, 1.0  ;;  %v2192_v34 = vpop.f32.mrf.mxu1 }
 0x254   :  { %2216 = vmatmul.mubr.msk.f32.gmra.mxu1 %vm545_vm13, %v540_v33  ;;  %v735_v17 = vpop.permute.xlu1 %734  ;;  %v791_v33 = vpop.permute.xlu0 %790 }
 0x255   :  { %v490_v36 = vpop.f32.mrf.mxu1  ;;  %2218 = vmatprep.mubr.msk.f32.mxu1 %vm2534_vm0, %v2533_v14 }
 0x256   :  { %v533_v37 = vsel %vm527_vm11, %v490_v36, %v517_v35 }
 0x257   :  { %v541_v38 = vsel %vm535_vm12, %v533_v37, 1.0  ;;  %v2195_v39 = vpop.f32.mrf.mxu1 }
 0x258   :  { %2219 = vmatmul.mubr.msk.f32.gmra.mxu1 %vm545_vm13, %v541_v38 }
 0x259   :  { %v495_v41 = vpop.f32.mrf.mxu1  ;;  %2221 = vmatprep.mubr.msk.f32.mxu1 %vm2534_vm0, %v2533_v14 }
 0x25a   :  { %v534_v42 = vsel %vm527_vm11, %v495_v41, %v519_v40 }
 0x25b   :  { %v542_v43 = vsel %vm535_vm12, %v534_v42, 1.0  ;;  %v2198_v44 = vpop.f32.mrf.mxu1 }
 0x25c   :  { %2222 = vmatmul.mubr.msk.f32.gmra.mxu1 %vm545_vm13, %v542_v43  ;;  %v783_v43 = vpop.permute.xlu0 %782 }
 0x25d   :  { %2281 = vmatprep.mubr.msk.f32.mxu1 %vm2534_vm0, %v2533_v14 }
 0x304   :  { %v2880_v45 = vpop.f32.mrf.mxu1 }
 0x305   :  { %vm706_vm5 = vcmp.gt.f32.partialorder %v2880_v45, 0.0 }
 0x306   :  { %v2205_v46 = vpop.f32.mrf.mxu1 }
 0x308   :  { %v2882_v48 = vpop.f32.mrf.mxu1 }
 0x309   :  { %v714_v40 = vmul.f32 0.01, %v2882_v48  ;;  %vm707_vm4 = vcmp.gt.f32.partialorder %v2882_v48, 0.0 }
 0x30a   :  { %v2208_v50 = vpop.f32.mrf.mxu1 }
 0x30b   :  { %v713_v50 = vmul.f32 0.01, %v2880_v45 }
 0x30c   :  { %v647_v52 = vpop.f32.mrf.mxu1 }
 0x30d   :  { %v715_v34 = vmul.f32 0.01, %v647_v52  ;;  %vm708_vm3 = vcmp.gt.f32.partialorder %v647_v52, 0.0 }
 0x30e   :  { %v2211_v54 = vpop.f32.mrf.mxu1 }
 0x30f   :  { %v722_v41 = vsel %vm708_vm3, %v647_v52, %v715_v34  ;;  %v721_v54 = vsel %vm707_vm4, %v2882_v48, %v714_v40 }
 0x310   :  { %v652_v58 = vpop.f32.mrf.mxu1  ;;  %v764_v46 = vmul.f32 %v740_v15, %v722_v41  ;;  %v954_v15 = vld [vmem:[%s3355_s3 + $0x40] sm:$0xff] }
 0x311   :  { %v716_v25 = vmul.f32 0.01, %v652_v58  ;;  %vm709_vm2 = vcmp.gt.f32.partialorder %v652_v58, 0.0 }
 0x312   :  { %v2214_v60 = vpop.f32.mrf.mxu1 }
 0x313   :  { %v723_v35 = vsel %vm709_vm2, %v652_v58, %v716_v25  ;;  %v763_v60 = vmul.f32 %v735_v17, %v721_v54  ;;  %v952_v17 = vld [vmem:[%s3355_s3 + $0x30] sm:$0xff] }
 0x314   :  { %v657_v62 = vpop.f32.mrf.mxu1  ;;  %v765_v38 = vmul.f32 %v745_v19, %v723_v35  ;;  %v950_v19 = vld [vmem:[%s3355_s3 + $0x20] sm:$0xff] }
 0x315   :  { %686 = vrot.lane.b32.xlu1 %v657_v62, %s2538_s18  ;;  %v730_v62 = vpop.permute.xlu0 %729 }
 0x316   :  { %v2217_v63 = vpop.f32.mrf.mxu1  ;;  %v800_v44 = vadd.f32 %v783_v43, %v765_v38 }
 0x317   :  { %v720_v63 = vsel %vm706_vm5, %v2880_v45, %v713_v50  ;;  %v957_v45 = vld [vmem:[%s3355_s3 + $0x58] sm:$0xff] }
 0x318   :  { %v662_v1 = vpop.f32.mrf.mxu1 }
 0x319   :  { %688 = vrot.lane.b32.xlu1 %v662_v1, %s2538_s18 }
 0x31a   :  { %v2220_v8 = vpop.f32.mrf.mxu1 }
 0x31c   :  { %v667_v9 = vpop.f32.mrf.mxu1 }
 0x31d   :  { %690 = vrot.lane.b32.xlu1 %v667_v9, %s2538_s18  ;;  %v762_v9 = vmul.f32 %v730_v62, %v720_v63 }
 0x31e   :  { %v2223_v10 = vpop.f32.mrf.mxu1 }
 0x321   :  { %778 = vperm.xlu1 %2488, %v2823_v4  }
 0x325   :  { %774 = vperm.xlu1 %2488, %v2831_v6  }
 0x329   :  { %770 = vperm.xlu1 %2488, %v2840_v7  }
 0x32d   :  { %2490 = vset.pattern.permute.xlu1 %v2531_v3 }
 0x387   :  { %v687_v18 = vpop.permute.xlu1 %686 }
 0x388   :  { %v717_v23 = vmul.f32 0.01, %v687_v18  ;;  %vm710_vm15 = vcmp.gt.f32.partialorder %v687_v18, 0.0 }
 0x38a   :  { %v724_v29 = vsel %vm710_vm15, %v687_v18, %v717_v23  ;;  %v951_v18 = vld [vmem:[%s3355_s3 + $0x28] sm:$0xff] }
 0x38b   :  { %v689_v20 = vpop.permute.xlu1 %688  ;;  %v766_v36 = vmul.f32 %v750_v12, %v724_v29  ;;  %v956_v12 = vld [vmem:[%s3355_s3 + $0x50] sm:$0xff] }
 0x38c   :  { %v718_v21 = vmul.f32 0.01, %v689_v20  ;;  %vm711_vm14 = vcmp.gt.f32.partialorder %v689_v20, 0.0 }
 0x38d   :  { %v801_v42 = vadd.f32 %v787_v13, %v766_v36  ;;  %v955_v13 = vld [vmem:[%s3355_s3 + $0x48] sm:$0xff] }
 0x38e   :  { %v725_v26 = vsel %vm711_vm14, %v689_v20, %v718_v21  ;;  %v949_v20 = vld [vmem:[%s3355_s3 + $0x18] sm:$0xff]  ;;  %v948_v21 = vld [vmem:[%s3355_s3 + $0x10] sm:$0xff] }
 0x38f   :  { %v691_v24 = vpop.permute.xlu1 %690  ;;  %v767_v31 = vmul.f32 %v755_v11, %v725_v26  ;;  %v958_v11 = vld [vmem:[%s3355_s3 + $0x60] sm:$0x1] }
 0x390   :  { %vm712_vm1 = vcmp.gt.f32.partialorder %v691_v24, 0.0  ;;  %v719_v27 = vmul.f32 0.01, %v691_v24  ;;  %2260 = vmatpush3.msk.msra.mxu1 %vm567_vm10, %v958_v11 }
 0x391   :  { %v802_v39 = vadd.f32 %v791_v33, %v767_v31  ;;  %2261 = vmatprep.subr.mxu1 %v2533_v14 }
 0x392   :  { %v726_v30 = vsel %vm712_vm1, %v691_v24, %v719_v27  ;;  %2262 = vmatpush3.msra.mxu1 %v957_v45 }
 0x393   :  { %v768_v32 = vmul.f32 %v760_v16, %v726_v30  ;;  %2263 = vmatprep.subr.mxu1 %v2533_v14  ;;  %v953_v16 = vld [vmem:[%s3355_s3 + $0x38] sm:$0xff] }
 0x394   :  { %2264 = vmatpush3.msra.mxu1 %v956_v12 }
 0x395   :  { %v2891_v37 = vadd.f32 %v795_v22, %v768_v32  ;;  %2265 = vmatprep.subr.mxu1 %v2533_v14  ;;  %v2540_v22 = vmov 3  }
 0x396   :  { %2266 = vmatpush3.msra.mxu1 %v955_v13 }
 0x397   :  { %2225 = vmatpush3.msra.mxu0 %v2891_v37  ;;  %2267 = vmatprep.subr.mxu1 %v2533_v14 }
 0x398   :  { %2226 = vmatprep.subr.mxu0 %v2533_v14  ;;  %2268 = vmatpush3.msra.mxu1 %v954_v15 }
 0x399   :  { %2227 = vmatpush3.msra.mxu0 %v802_v39  ;;  %2269 = vmatprep.subr.mxu1 %v2533_v14 }
 0x39a   :  { %2228 = vmatprep.subr.mxu0 %v2533_v14  ;;  %2270 = vmatpush3.msra.mxu1 %v953_v16 }
 0x39b   :  { %2229 = vmatpush3.msra.mxu0 %v801_v42  ;;  %2271 = vmatprep.subr.mxu1 %v2533_v14 }
 0x39c   :  { %2230 = vmatprep.subr.mxu0 %v2533_v14  ;;  %v779_v58 = vpop.permute.xlu1 %778  ;;  %2272 = vmatpush3.msra.mxu1 %v952_v17 }
 0x39d   :  { %v799_v52 = vadd.f32 %v779_v58, %v764_v46  ;;  %2231 = vmatpush3.msra.mxu0 %v800_v44  ;;  %2273 = vmatprep.subr.mxu1 %v2533_v14 }
 0x39e   :  { %2232 = vmatprep.subr.mxu0 %v2533_v14  ;;  %2274 = vmatpush3.msra.mxu1 %v951_v18 }
 0x39f   :  { %2233 = vmatpush3.msra.mxu0 %v799_v52  ;;  %2275 = vmatprep.subr.mxu1 %v2533_v14 }
 0x3a0   :  { %v775_v1 = vpop.permute.xlu1 %774  ;;  %2234 = vmatprep.subr.mxu0 %v2533_v14  ;;  %2276 = vmatpush3.msra.mxu1 %v950_v19 }
 0x3a1   :  { %v798_v8 = vadd.f32 %v775_v1, %v763_v60  ;;  %2277 = vmatprep.subr.mxu1 %v2533_v14 }
 0x3a2   :  { %2278 = vmatpush3.msra.mxu1 %v949_v20 }
 0x3a3   :  { %913 = vrot.lane.b32.xlu1 %v798_v8, %s2539_s19  ;;  %2235 = vmatpush3.msra.mxu0 %v798_v8 }
 0x3a4   :  { %v771_v48 = vpop.permute.xlu1 %770  ;;  %2236 = vmatprep.subr.mxu0 %v2533_v14  ;;  %2279 = vmatprep.subr.mxu1 %v2533_v14 }
 0x3a5   :  { %v797_v10 = vadd.f32 %v771_v48, %v762_v9  ;;  %2280 = vmatpush3.msra.mxu1 %v948_v21 }
 0x3a6   :  { %2337 = vmatprep.subr.mxu1 %v2533_v14 }
 0x3a7   :  { %917 = vrot.lane.b32.xlu1 %v800_v44, %s2539_s19  ;;  %911 = vrot.lane.b32.xlu0 %v797_v10, %s2539_s19 }
 0x3a8   :  { %2237 = vmatpush3.msra.mxu0 %v797_v10 }
 0x3a9   :  { %2239 = vmatmul.mubr.msk.f32.vlgmr.msra.gmra.mxu0 %vm377_vm9, %v2760_v47  ;;  %2302 = vmatprep.subr.mxu0 %v2533_v14 }
 0x3aa   :  { %2241 = vmatprep.mubr.msk.f32.mxu0 %vm2534_vm0, %v2533_v14 }
 0x3ab   :  { %921 = vrot.lane.b32.xlu1 %v802_v39, %s2539_s19  ;;  %915 = vrot.lane.b32.xlu0 %v799_v52, %s2539_s19 }
 0x3ad   :  { %2242 = vmatmul.mubr.msk.f32.gmra.mxu0 %vm377_vm9, %v2768_v49 }
 0x3ae   :  { %2244 = vmatprep.mubr.msk.f32.mxu0 %vm2534_vm0, %v2533_v14 }
 0x3af   :  { %919 = vrot.lane.b32.xlu0 %v801_v42, %s2539_s19  ;;  %1165 = vperm.xlu1 %2490, %v2811_v0  }
 0x3b1   :  { %2245 = vmatmul.mubr.msk.f32.gmra.mxu0 %vm377_vm9, %v2774_v51 }
 0x3b2   :  { %2247 = vmatprep.mubr.msk.f32.mxu0 %vm2534_vm0, %v2533_v14 }
 0x3b3   :  { %923 = vrot.lane.b32.xlu0 %v2891_v37, %s2539_s19  ;;  %1161 = vperm.xlu1 %2490, %v2670_v55  }
 0x3b5   :  { %2248 = vmatmul.mubr.msk.f32.gmra.mxu0 %vm377_vm9, %v2780_v53 }
 0x3b6   :  { %2250 = vmatprep.mubr.msk.f32.mxu0 %vm2534_vm0, %v2533_v14 }
 0x3b7   :  { %1153 = vperm.xlu0 %2491, %v2817_v2   ;;  %1157 = vperm.xlu1 %2490, %v2676_v56  }
 0x3b9   :  { %2251 = vmatmul.mubr.msk.f32.gmra.mxu0 %vm377_vm9, %v2786_v57 }
 0x3ba   :  { %2253 = vmatprep.mubr.msk.f32.mxu0 %vm2534_vm0, %v2533_v14 }
 0x3bb   :  { %2493 = vset.pattern.permute.xlu1 %v2540_v22  ;;  %2492 = vset.pattern.permute.xlu0 %v2540_v22 }
 0x3bc   :  { %1192 = vperm.xlu1 %2493, %v2676_v56   ;;  %1200 = vperm.xlu0 %2492, %v2811_v0  }
 0x3bd   :  { %2254 = vmatmul.mubr.msk.f32.gmra.mxu0 %vm377_vm9, %v2792_v59 }
 0x3be   :  { %2256 = vmatprep.mubr.msk.f32.mxu0 %vm2534_vm0, %v2533_v14 }
 0x3c0   :  { %2494 = vset.pattern.permute.xlu1 %v2531_v3  ;;  %1196 = vperm.xlu0 %2492, %v2670_v55  }
 0x3c1   :  { %2257 = vmatmul.mubr.msk.f32.gmra.mxu0 %vm377_vm9, %v2798_v61  ;;  %1149 = vperm.xlu1 %2494, %v2823_v4  }
 0x3c2   :  { %2316 = vmatprep.mubr.msk.f32.mxu0 %vm2534_vm0, %v2533_v14 }
 0x415   :  { %v914_v56 = vpop.permute.xlu1 %913 }
 0x419   :  { %v912_v23 = vpop.permute.xlu0 %911  ;;  %v918_v36 = vpop.permute.xlu1 %917 }
 0x41d   :  { %v916_v31 = vpop.permute.xlu0 %915  ;;  %v922_v50 = vpop.permute.xlu1 %921 }
 0x421   :  { %v920_v41 = vpop.permute.xlu0 %919 }
 0x425   :  { %v924_v62 = vpop.permute.xlu0 %923 }
 0x469   :  { %v870_v24 = vpop.f32.mrf.mxu0 }
 0x46a   :  { %v933_v25 = vsel %vm932_vm6, %v870_v24, %v912_v23  ;;  %v1166_v24 = vpop.permute.xlu1 %1165 }
 0x46b   :  { %v941_v26 = vsel %vm940_vm7, %v933_v25, 1.0  ;;  %v2240_v27 = vpop.f32.mrf.mxu0 }
 0x46c   :  { %2282 = vmatmul.mubr.msk.f32.vlgmr.msra.gmra.mxu1 %vm959_vm8, %v941_v26  ;;  %v1154_v27 = vpop.permute.xlu0 %1153 }
 0x46d   :  { %v875_v0 = vpop.f32.mrf.mxu0  ;;  %2284 = vmatprep.mubr.msk.f32.mxu1 %vm2534_vm0, %v2533_v14 }
 0x46e   :  { %v934_v55 = vsel %vm932_vm6, %v875_v0, %v914_v56  ;;  %v1162_v25 = vpop.permute.xlu1 %1161 }
 0x46f   :  { %v942_v29 = vsel %vm940_vm7, %v934_v55, 1.0  ;;  %v2243_v30 = vpop.f32.mrf.mxu0 }
 0x470   :  { %2285 = vmatmul.mubr.msk.f32.gmra.mxu1 %vm959_vm8, %v942_v29  ;;  %v1201_v56 = vpop.permute.xlu0 %1200 }
 0x471   :  { %v880_v32 = vpop.f32.mrf.mxu0  ;;  %2287 = vmatprep.mubr.msk.f32.mxu1 %vm2534_vm0, %v2533_v14 }
 0x472   :  { %v935_v33 = vsel %vm932_vm6, %v880_v32, %v916_v31  ;;  %v1158_v26 = vpop.permute.xlu1 %1157 }
 0x473   :  { %v943_v34 = vsel %vm940_vm7, %v935_v33, 1.0  ;;  %v2246_v35 = vpop.f32.mrf.mxu0 }
 0x474   :  { %2288 = vmatmul.mubr.msk.f32.gmra.mxu1 %vm959_vm8, %v943_v34  ;;  %v1197_v0 = vpop.permute.xlu0 %1196 }
 0x475   :  { %v885_v37 = vpop.f32.mrf.mxu0  ;;  %2290 = vmatprep.mubr.msk.f32.mxu1 %vm2534_vm0, %v2533_v14 }
 0x476   :  { %v936_v38 = vsel %vm932_vm6, %v885_v37, %v918_v36 }
 0x477   :  { %v944_v39 = vsel %vm940_vm7, %v936_v38, 1.0  ;;  %v2249_v40 = vpop.f32.mrf.mxu0 }
 0x478   :  { %2291 = vmatmul.mubr.msk.f32.gmra.mxu1 %vm959_vm8, %v944_v39 }
 0x479   :  { %v890_v42 = vpop.f32.mrf.mxu0  ;;  %2293 = vmatprep.mubr.msk.f32.mxu1 %vm2534_vm0, %v2533_v14 }
 0x47a   :  { %v937_v43 = vsel %vm932_vm6, %v890_v42, %v920_v41 }
 0x47b   :  { %v945_v44 = vsel %vm940_vm7, %v937_v43, 1.0  ;;  %v2252_v46 = vpop.f32.mrf.mxu0 }
 0x47c   :  { %2294 = vmatmul.mubr.msk.f32.gmra.mxu1 %vm959_vm8, %v945_v44 }
 0x47d   :  { %v895_v54 = vpop.f32.mrf.mxu0  ;;  %2296 = vmatprep.mubr.msk.f32.mxu1 %vm2534_vm0, %v2533_v14 }
 0x47e   :  { %v938_v58 = vsel %vm932_vm6, %v895_v54, %v922_v50 }
 0x47f   :  { %v946_v52 = vsel %vm940_vm7, %v938_v58, 1.0  ;;  %v2255_v60 = vpop.f32.mrf.mxu0 }
 0x480   :  { %2297 = vmatmul.mubr.msk.f32.gmra.mxu1 %vm959_vm8, %v946_v52 }
 0x481   :  { %v900_v63 = vpop.f32.mrf.mxu0  ;;  %2299 = vmatprep.mubr.msk.f32.mxu1 %vm2534_vm0, %v2533_v14 }
 0x482   :  { %v939_v1 = vsel %vm932_vm6, %v900_v63, %v924_v62 }
 0x483   :  { %v947_v8 = vsel %vm940_vm7, %v939_v1, 1.0  ;;  %v2258_v9 = vpop.f32.mrf.mxu0 }
 0x484   :  { %2300 = vmatmul.mubr.msk.f32.gmra.mxu1 %vm959_vm8, %v947_v8 }
 0x485   :  { %2359 = vmatprep.mubr.msk.f32.mxu1 %vm2534_vm0, %v2533_v14 }
 0x52c   :  { %v3034_v48 = vpop.f32.mrf.mxu1 }
 0x52d   :  { %v1126_v60 = vmul.f32 0.01, %v3034_v48  ;;  %vm1119_vm2 = vcmp.gt.f32.partialorder %v3034_v48, 0.0 }
 0x52e   :  { %v2283_v10 = vpop.f32.mrf.mxu1 }
 0x52f   :  { %v1133_v10 = vsel %vm1119_vm2, %v3034_v48, %v1126_v60  ;;  %v1360_v48 = vld [vmem:[%s3355_s3 + $0xa8] sm:$0xff] }
 0x530   :  { %v3036_v11 = vpop.f32.mrf.mxu1 }
 0x531   :  { %v1127_v43 = vmul.f32 0.01, %v3036_v11  ;;  %vm1120_vm1 = vcmp.gt.f32.partialorder %v3036_v11, 0.0 }
 0x532   :  { %v2286_v45 = vpop.f32.mrf.mxu1 }
 0x533   :  { %v1134_v62 = vsel %vm1120_vm1, %v3036_v11, %v1127_v43 }
 0x534   :  { %v1060_v12 = vpop.f32.mrf.mxu1 }
 0x535   :  { %v1128_v35 = vmul.f32 0.01, %v1060_v12  ;;  %vm1121_vm15 = vcmp.gt.f32.partialorder %v1060_v12, 0.0 }
 0x536   :  { %v2289_v13 = vpop.f32.mrf.mxu1 }
 0x537   :  { %v1135_v41 = vsel %vm1121_vm15, %v1060_v12, %v1128_v35  ;;  %v1362_v13 = vld [vmem:[%s3355_s3 + $0xb8] sm:$0x1]  ;;  %vm1885_vm15 = vcmask 17408  }
 0x538   :  { %v1065_v15 = vpop.f32.mrf.mxu1  ;;  %2338 = vmatpush3.msk.msra.mxu1 %vm567_vm10, %v1362_v13 }
 0x539   :  { %v1129_v34 = vmul.f32 0.01, %v1065_v15  ;;  %vm1122_vm14 = vcmp.gt.f32.partialorder %v1065_v15, 0.0  ;;  %2339 = vmatprep.subr.mxu1 %v2533_v14 }
 0x53a   :  { %v2292_v16 = vpop.f32.mrf.mxu1 }
 0x53b   :  { %v1136_v39 = vsel %vm1122_vm14, %v1065_v15, %v1129_v34  ;;  %v1361_v15 = vld [vmem:[%s3355_s3 + $0xb0] sm:$0xff]  ;;  %v1359_v16 = vld [vmem:[%s3355_s3 + $0xa0] sm:$0xff]  ;;  %vm1807_vm14 = vcmask 818176  }
 0x53c   :  { %v1070_v17 = vpop.f32.mrf.mxu1  ;;  %v1171_v44 = vmul.f32 %v1154_v27, %v1136_v39  ;;  %2340 = vmatpush3.msra.mxu1 %v1361_v15 }
 0x53d   :  { %1099 = vrot.lane.b32.xlu1 %v1070_v17, %s2538_s18  ;;  %2341 = vmatprep.subr.mxu1 %v2533_v14  ;;  %v1357_v17 = vld [vmem:[%s3355_s3 + $0x90] sm:$0xff] }
 0x53e   :  { %v2295_v18 = vpop.f32.mrf.mxu1  ;;  %2342 = vmatpush3.msra.mxu1 %v1360_v48 }
 0x53f   :  { %2343 = vmatprep.subr.mxu1 %v2533_v14  ;;  %v1355_v18 = vld [vmem:[%s3355_s3 + $0x80] sm:$0xff] }
 0x540   :  { %v1075_v19 = vpop.f32.mrf.mxu1  ;;  %2344 = vmatpush3.msra.mxu1 %v1359_v16 }
 0x541   :  { %1101 = vrot.lane.b32.xlu1 %v1075_v19, %s2538_s18  ;;  %2345 = vmatprep.subr.mxu1 %v2533_v14 }
 0x542   :  { %v2298_v20 = vpop.f32.mrf.mxu1 }
 0x544   :  { %v1080_v21 = vpop.f32.mrf.mxu1 }
 0x545   :  { %1145 = vperm.xlu1 %2494, %v2831_v6   ;;  %1103 = vrot.lane.b32.xlu0 %v1080_v21, %s2538_s18 }
 0x546   :  { %v2301_v23 = vpop.f32.mrf.mxu1 }
 0x549   :  { %2495 = vset.pattern.permute.xlu1 %v2540_v22  ;;  %1188 = vperm.xlu0 %2492, %v2817_v2   ;;  %v1193_v22 = vpop.permute.xlu1 %1192 }
 0x54a   :  { %1184 = vperm.xlu1 %2495, %v2823_v4  }
 0x54d   :  { %2496 = vset.pattern.permute.xlu0 %v2531_v3  ;;  %v1150_v2 = vpop.permute.xlu1 %1149 }
 0x54e   :  { %1180 = vperm.xlu1 %2495, %v2831_v6   ;;  %1141 = vperm.xlu0 %2496, %v2840_v7   ;;  %v1170_v46 = vmul.f32 %v1150_v2, %v1135_v41 }
 0x552   :  { %1176 = vperm.xlu1 %2495, %v2840_v7   ;;  %2497 = vset.pattern.permute.xlu0 %v2532_v5 }
 0x556   :  { %2498 = vset.pattern.permute.xlu1 %v2532_v5 }
 0x5af   :  { %v1100_v4 = vpop.permute.xlu1 %1099 }
 0x5b0   :  { %v1130_v6 = vmul.f32 0.01, %v1100_v4  ;;  %vm1123_vm12 = vcmp.gt.f32.partialorder %v1100_v4, 0.0 }
 0x5b2   :  { %v1137_v31 = vsel %vm1123_vm12, %v1100_v4, %v1130_v6 }
 0x5b3   :  { %v1102_v3 = vpop.permute.xlu1 %1101  ;;  %v1172_v36 = vmul.f32 %v1158_v26, %v1137_v31 }
 0x5b4   :  { %v1131_v55 = vmul.f32 0.01, %v1102_v3  ;;  %vm1124_vm11 = vcmp.gt.f32.partialorder %v1102_v3, 0.0 }
 0x5b5   :  { %v1207_v42 = vadd.f32 %v1193_v22, %v1172_v36 }
 0x5b6   :  { %v1138_v7 = vsel %vm1124_vm11, %v1102_v3, %v1131_v55  ;;  %vm1658_vm11 = vcmask 416768  }
 0x5b7   :  { %v1104_v29 = vpop.permute.xlu0 %1103  ;;  %v1173_v32 = vmul.f32 %v1162_v25, %v1138_v7 }
 0x5b8   :  { %vm1125_vm13 = vcmp.gt.f32.partialorder %v1104_v29, 0.0  ;;  %v1132_v30 = vmul.f32 0.01, %v1104_v29 }
 0x5b9   :  { %v1208_v38 = vadd.f32 %v1197_v0, %v1173_v32 }
 0x5ba   :  { %v1139_v5 = vsel %vm1125_vm13, %v1104_v29, %v1132_v30  ;;  %vm1788_vm13 = vcmask 408576  }
 0x5bb   :  { %v1174_v33 = vmul.f32 %v1166_v24, %v1139_v5 }
 0x5bd   :  { %v3051_v37 = vadd.f32 %v1201_v56, %v1174_v33 }
 0x5bf   :  { %2303 = vmatpush3.msra.mxu0 %v3051_v37 }
 0x5c0   :  { %v1146_v40 = vpop.permute.xlu1 %1145  ;;  %2304 = vmatprep.subr.mxu0 %v2533_v14 }
 0x5c1   :  { %2305 = vmatpush3.msra.mxu0 %v1208_v38  ;;  %v1169_v63 = vmul.f32 %v1146_v40, %v1134_v62 }
 0x5c2   :  { %2306 = vmatprep.subr.mxu0 %v2533_v14 }
 0x5c3   :  { %2307 = vmatpush3.msra.mxu0 %v1207_v42 }
 0x5c4   :  { %v1189_v50 = vpop.permute.xlu0 %1188  ;;  %2308 = vmatprep.subr.mxu0 %v2533_v14 }
 0x5c5   :  { %v1206_v54 = vadd.f32 %v1189_v50, %v1171_v44  ;;  %v1185_v58 = vpop.permute.xlu1 %1184 }
 0x5c6   :  { %v1205_v52 = vadd.f32 %v1185_v58, %v1170_v46 }
 0x5c7   :  { %2309 = vmatpush3.msra.mxu0 %v1206_v54 }
 0x5c8   :  { %2310 = vmatprep.subr.mxu0 %v2533_v14 }
 0x5c9   :  { %v1181_v1 = vpop.permute.xlu1 %1180  ;;  %2311 = vmatpush3.msra.mxu0 %v1205_v52  ;;  %v1142_v8 = vpop.permute.xlu0 %1141 }
 0x5ca   :  { %v1204_v9 = vadd.f32 %v1181_v1, %v1169_v63  ;;  %2312 = vmatprep.subr.mxu0 %v2533_v14  ;;  %v1168_v45 = vmul.f32 %v1142_v8, %v1133_v10 }
 0x5cc   :  { %1319 = vrot.lane.b32.xlu1 %v1204_v9, %s2539_s19  ;;  %2313 = vmatpush3.msra.mxu0 %v1204_v9 }
 0x5cd   :  { %v1177_v12 = vpop.permute.xlu1 %1176  ;;  %2314 = vmatprep.subr.mxu0 %v2533_v14 }
 0x5ce   :  { %v1203_v11 = vadd.f32 %v1177_v12, %v1168_v45 }
 0x5d0   :  { %1323 = vrot.lane.b32.xlu1 %v1206_v54, %s2539_s19  ;;  %1317 = vrot.lane.b32.xlu0 %v1203_v11, %s2539_s19 }
 0x5d1   :  { %2315 = vmatpush3.msra.mxu0 %v1203_v11 }
 0x5d2   :  { %2317 = vmatmul.mubr.msk.f32.vlgmr.msra.gmra.mxu0 %vm377_vm9, %v2760_v47  ;;  %2380 = vmatprep.subr.mxu0 %v2533_v14  ;;  %v1358_v47 = vld [vmem:[%s3355_s3 + $0x98] sm:$0xff] }
 0x5d3   :  { %2319 = vmatprep.mubr.msk.f32.mxu0 %vm2534_vm0, %v2533_v14  ;;  %2346 = vmatpush3.msra.mxu1 %v1358_v47 }
 0x5d4   :  { %1327 = vrot.lane.b32.xlu1 %v1208_v38, %s2539_s19  ;;  %1321 = vrot.lane.b32.xlu0 %v1205_v52, %s2539_s19 }
 0x5d5   :  { %2347 = vmatprep.subr.mxu1 %v2533_v14 }
 0x5d6   :  { %2320 = vmatmul.mubr.msk.f32.gmra.mxu0 %vm377_vm9, %v2768_v49  ;;  %v1356_v49 = vld [vmem:[%s3355_s3 + $0x88] sm:$0xff]  ;;  %2348 = vmatpush3.msra.mxu1 %v1357_v17 }
 0x5d7   :  { %2322 = vmatprep.mubr.msk.f32.mxu0 %vm2534_vm0, %v2533_v14  ;;  %2349 = vmatprep.subr.mxu1 %v2533_v14 }
 0x5d8   :  { %1325 = vrot.lane.b32.xlu0 %v1207_v42, %s2539_s19  ;;  %2350 = vmatpush3.msra.mxu1 %v1356_v49 }
 0x5d9   :  { %2351 = vmatprep.subr.mxu1 %v2533_v14 }
 0x5da   :  { %2323 = vmatmul.mubr.msk.f32.gmra.mxu0 %vm377_vm9, %v2774_v51  ;;  %v1354_v51 = vld [vmem:[%s3355_s3 + $0x78] sm:$0xff]  ;;  %2352 = vmatpush3.msra.mxu1 %v1355_v18 }
 0x5db   :  { %2325 = vmatprep.mubr.msk.f32.mxu0 %vm2534_vm0, %v2533_v14  ;;  %2353 = vmatprep.subr.mxu1 %v2533_v14 }
 0x5dc   :  { %1329 = vrot.lane.b32.xlu0 %v3051_v37, %s2539_s19  ;;  %2354 = vmatpush3.msra.mxu1 %v1354_v51 }
 0x5dd   :  { %2355 = vmatprep.subr.mxu1 %v2533_v14 }
 0x5de   :  { %2326 = vmatmul.mubr.msk.f32.gmra.mxu0 %vm377_vm9, %v2780_v53  ;;  %v1353_v53 = vld [vmem:[%s3355_s3 + $0x70] sm:$0xff] }
 0x5df   :  { %2328 = vmatprep.mubr.msk.f32.mxu0 %vm2534_vm0, %v2533_v14  ;;  %2356 = vmatpush3.msra.mxu1 %v1353_v53 }
 0x5e0   :  { %2357 = vmatprep.subr.mxu1 %v2533_v14 }
 0x5e2   :  { %2329 = vmatmul.mubr.msk.f32.gmra.mxu0 %vm377_vm9, %v2786_v57  ;;  %v1352_v57 = vld [vmem:[%s3355_s3 + $0x68] sm:$0xff]  ;;  %s2541_s3 = smov 127  }
 0x5e3   :  { %2331 = vmatprep.mubr.msk.f32.mxu0 %vm2534_vm0, %v2533_v14  ;;  %2358 = vmatpush3.msra.mxu1 %v1352_v57 }
 0x5e4   :  { %2397 = vmatprep.subr.mxu1 %v2533_v14 }
 0x5e6   :  { %2332 = vmatmul.mubr.msk.f32.gmra.mxu0 %vm377_vm9, %v2792_v59 }
 0x5e7   :  { %2334 = vmatprep.mubr.msk.f32.mxu0 %vm2534_vm0, %v2533_v14 }
 0x5ea   :  { %2335 = vmatmul.mubr.msk.f32.gmra.mxu0 %vm377_vm9, %v2798_v61 }
 0x5eb   :  { %2394 = vmatprep.mubr.msk.f32.mxu0 %vm2534_vm0, %v2533_v14 }
 0x63e   :  { %v1320_v23 = vpop.permute.xlu1 %1319 }
 0x642   :  { %v1318_v59 = vpop.permute.xlu0 %1317  ;;  %v1324_v3 = vpop.permute.xlu1 %1323 }
 0x646   :  { %v1322_v27 = vpop.permute.xlu0 %1321  ;;  %v1328_v34 = vpop.permute.xlu1 %1327 }
 0x64a   :  { %v1326_v30 = vpop.permute.xlu0 %1325 }
 0x64e   :  { %v1330_v39 = vpop.permute.xlu0 %1329 }
 0x692   :  { %v1276_v19 = vpop.f32.mrf.mxu0 }
 0x693   :  { %v1338_v61 = vsel %vm932_vm6, %v1276_v19, %v1318_v59 }
 0x694   :  { %v1345_v20 = vsel %vm940_vm7, %v1338_v61, 1.0  ;;  %v2318_v21 = vpop.f32.mrf.mxu0 }
 0x695   :  { %2360 = vmatmul.mubr.msk.f32.vlgmr.msra.gmra.mxu1 %vm959_vm8, %v1345_v20 }
 0x696   :  { %v1281_v24 = vpop.f32.mrf.mxu0  ;;  %2362 = vmatprep.mubr.msk.f32.mxu1 %vm2534_vm0, %v2533_v14 }
 0x697   :  { %v1339_v25 = vsel %vm932_vm6, %v1281_v24, %v1320_v23 }
 0x698   :  { %v1346_v26 = vsel %vm940_vm7, %v1339_v25, 1.0  ;;  %v2321_v22 = vpop.f32.mrf.mxu0 }
 0x699   :  { %2363 = vmatmul.mubr.msk.f32.gmra.mxu1 %vm959_vm8, %v1346_v26 }
 0x69a   :  { %v1286_v2 = vpop.f32.mrf.mxu0  ;;  %2365 = vmatprep.mubr.msk.f32.mxu1 %vm2534_vm0, %v2533_v14 }
 0x69b   :  { %v1340_v56 = vsel %vm932_vm6, %v1286_v2, %v1322_v27 }
 0x69c   :  { %v1347_v4 = vsel %vm940_vm7, %v1340_v56, 1.0  ;;  %v2324_v0 = vpop.f32.mrf.mxu0 }
 0x69d   :  { %2366 = vmatmul.mubr.msk.f32.gmra.mxu1 %vm959_vm8, %v1347_v4  ;;  %v2502_v0 = vld [vmem:[%s3356_s4 + $0x18] sm:$0xff] }
 0x69e   :  { %v1291_v55 = vpop.f32.mrf.mxu0  ;;  %2368 = vmatprep.mubr.msk.f32.mxu1 %vm2534_vm0, %v2533_v14 }
 0x69f   :  { %v1341_v6 = vsel %vm932_vm6, %v1291_v55, %v1324_v3 }
 0x6a0   :  { %v1348_v29 = vsel %vm940_vm7, %v1341_v6, 1.0  ;;  %v2327_v7 = vpop.f32.mrf.mxu0  ;;  %v2503_v6 = vld [vmem:[%s3356_s4 + $0x20] sm:$0xff] }
 0x6a1   :  { %2369 = vmatmul.mubr.msk.f32.gmra.mxu1 %vm959_vm8, %v1348_v29  ;;  %v2504_v7 = vld [vmem:[%s3356_s4 + $0x28] sm:$0xff] }
 0x6a2   :  { %v1296_v31 = vpop.f32.mrf.mxu0  ;;  %2371 = vmatprep.mubr.msk.f32.mxu1 %vm2534_vm0, %v2533_v14 }
 0x6a3   :  { %v1342_v5 = vsel %vm932_vm6, %v1296_v31, %v1326_v30  ;;  %v2505_v31 = vld [vmem:[%s3356_s4 + $0x30] sm:$0xff] }
 0x6a4   :  { %v1349_v32 = vsel %vm940_vm7, %v1342_v5, 1.0  ;;  %v2330_v33 = vpop.f32.mrf.mxu0 }
 0x6a5   :  { %2372 = vmatmul.mubr.msk.f32.gmra.mxu1 %vm959_vm8, %v1349_v32  ;;  %v2506_v33 = vld [vmem:[%s3356_s4 + $0x10] sm:$0xff] }
 0x6a6   :  { %v1301_v35 = vpop.f32.mrf.mxu0  ;;  %2374 = vmatprep.mubr.msk.f32.mxu1 %vm2534_vm0, %v2533_v14 }
 0x6a7   :  { %v1343_v36 = vsel %vm932_vm6, %v1301_v35, %v1328_v34 }
 0x6a8   :  { %v1350_v37 = vsel %vm940_vm7, %v1343_v36, 1.0  ;;  %v2333_v38 = vpop.f32.mrf.mxu0  ;;  %v2507_v36 = vld [vmem:[%s3356_s4 + $0x8] sm:$0xff] }
 0x6a9   :  { %2375 = vmatmul.mubr.msk.f32.gmra.mxu1 %vm959_vm8, %v1350_v37 }
 0x6aa   :  { %v1306_v40 = vpop.f32.mrf.mxu0  ;;  %2377 = vmatprep.mubr.msk.f32.mxu1 %vm2534_vm0, %v2533_v14 }
 0x6ab   :  { %v1344_v41 = vsel %vm932_vm6, %v1306_v40, %v1330_v39  ;;  %v2508_v39 = vld [vmem:[%s3356_s4] sm:$0xff] }
 0x6ac   :  { %v1351_v42 = vsel %vm940_vm7, %v1344_v41, 1.0  ;;  %v2336_v43 = vpop.f32.mrf.mxu0  ;;  %v3252_v41 = vld [vmem:[%s3357_s5 + $0x8] sm:$0xf] }
 0x6ad   :  { %2378 = vmatmul.mubr.msk.f32.gmra.mxu1 %vm959_vm8, %v1351_v42  ;;  %vm1650_vm8 = vcmask 7168  }
 0x6ae   :  { %2423 = vmatprep.mubr.msk.f32.mxu1 %vm2534_vm0, %v2533_v14 }
 0x755   :  { %v1453_v44 = vpop.f32.mrf.mxu1 }
 0x756   :  { %v1529_v59 = vmul.f32 0.01, %v1453_v44  ;;  %vm1522_vm7 = vcmp.gt.f32.partialorder %v1453_v44, 0.0 }
 0x757   :  { %v2361_v46 = vpop.f32.mrf.mxu1 }
 0x758   :  { %v3204_v20 = vsel %vm1522_vm7, %v1453_v44, %v1529_v59  ;;  %v2546_v59 = vmov 51  }
 0x759   :  { %v1458_v50 = vpop.f32.mrf.mxu1  ;;  %v1587_v27 = vmul.f32 %v3204_v20, %v3204_v20 }
 0x75a   :  { %v1530_v18 = vmul.f32 0.01, %v1458_v50  ;;  %vm1523_vm5 = vcmp.gt.f32.partialorder %v1458_v50, 0.0 }
 0x75b   :  { %v2364_v54 = vpop.f32.mrf.mxu1 }
 0x75c   :  { %v3198_v19 = vsel %vm1523_vm5, %v1458_v50, %v1530_v18 }
 0x75d   :  { %v1463_v58 = vpop.f32.mrf.mxu1  ;;  %v1588_v22 = vmul.f32 %v3198_v19, %v3198_v19 }
 0x75e   :  { %v1531_v51 = vmul.f32 0.01, %v1463_v58  ;;  %vm1524_vm6 = vcmp.gt.f32.partialorder %v1463_v58, 0.0 }
 0x75f   :  { %v2367_v52 = vpop.f32.mrf.mxu1 }
 0x760   :  { %v3200_v61 = vsel %vm1524_vm6, %v1463_v58, %v1531_v51 }
 0x761   :  { %v1468_v60 = vpop.f32.mrf.mxu1  ;;  %v1589_v26 = vmul.f32 %v3200_v61, %v3200_v61 }
 0x762   :  { %v1532_v16 = vmul.f32 0.01, %v1468_v60  ;;  %vm1525_vm3 = vcmp.gt.f32.partialorder %v1468_v60, 0.0 }
 0x763   :  { %v2370_v62 = vpop.f32.mrf.mxu1 }
 0x764   :  { %v3192_v53 = vsel %vm1525_vm3, %v1468_v60, %v1532_v16 }
 0x765   :  { %v1473_v63 = vpop.f32.mrf.mxu1  ;;  %v1590_v24 = vmul.f32 %v3192_v53, %v3192_v53 }
 0x767   :  { %v2373_v1 = vpop.f32.mrf.mxu1 }
 0x769   :  { %v1478_v8 = vpop.f32.mrf.mxu1 }
 0x76a   :  { %1504 = vrot.lane.b32.xlu0 %v1478_v8, %s2541_s3 }
 0x76b   :  { %v2376_v9 = vpop.f32.mrf.mxu1 }
 0x76d   :  { %v1483_v10 = vpop.f32.mrf.mxu1 }
 0x76e   :  { %1506 = vrot.lane.b32.xlu1 %v1483_v10, %s2541_s3 }
 0x76f   :  { %v2379_v45 = vpop.f32.mrf.mxu1 }
 0x772   :  { %1502 = vrot.lane.b32.xlu1 %v1473_v63, %s2541_s3 }
 0x7dc   :  { %v1505_v12 = vpop.permute.xlu0 %1504 }
 0x7dd   :  { %vm1527_vm0 = vcmp.gt.f32.partialorder %v1505_v12, 0.0  ;;  %v1534_v11 = vmul.f32 0.01, %v1505_v12 }
 0x7df   :  { %v3186_v13 = vsel %vm1527_vm0, %v1505_v12, %v1534_v11 }
 0x7e0   :  { %1572 = vperm.xlu1 %2498, %v3186_v13   ;;  %v1507_v15 = vpop.permute.xlu1 %1506  ;;  %v1592_v21 = vmul.f32 %v3186_v13, %v3186_v13 }
 0x7e1   :  { %vm1528_vm10 = vcmp.gt.f32.partialorder %v1507_v15, 0.0  ;;  %v1535_v48 = vmul.f32 0.01, %v1507_v15 }
 0x7e3   :  { %v3189_v47 = vsel %vm1528_vm10, %v1507_v15, %v1535_v48 }
 0x7e4   :  { %1577 = vperm.xlu0 %2497, %v3189_v47   ;;  %v1503_v17 = vpop.permute.xlu1 %1502  ;;  %v1593_v25 = vmul.f32 %v3189_v47, %v3189_v47 }
 0x7e5   :  { %vm1526_vm4 = vcmp.gt.f32.partialorder %v1503_v17, 0.0  ;;  %v1533_v49 = vmul.f32 0.01, %v1503_v17 }
 0x7e7   :  { %v3194_v57 = vsel %vm1526_vm4, %v1503_v17, %v1533_v49 }
 0x7e8   :  { %1562 = vperm.xlu0 %2497, %v3192_v53   ;;  %1567 = vperm.xlu1 %2498, %v3194_v57   ;;  %v1591_v23 = vmul.f32 %v3194_v57, %v3194_v57 }
 0x7ec   :  { %1552 = vperm.xlu0 %2497, %v3198_v19   ;;  %1557 = vperm.xlu1 %2498, %v3200_v61  }
 0x7f0   :  { %1547 = vperm.xlu1 %2498, %v3204_v20   ;;  %2499 = vset.pattern.permute.xlu0 %v2546_v59 }
 0x7f4   :  { %1639 = vrot.lane.b32.xlu1 %v1592_v21, %s2542_s13 }
 0x7f8   :  { %1637 = vrot.lane.b32.xlu1 %v1591_v23, %s2542_s13 }
 0x7fc   :  { %1635 = vrot.lane.b32.xlu1 %v1590_v24, %s2542_s13 }
 0x800   :  { %1641 = vrot.lane.b32.xlu1 %v1593_v25, %s2542_s13 }
 0x804   :  { %1633 = vrot.lane.b32.xlu1 %v1589_v26, %s2542_s13 }
 0x808   :  { %1631 = vrot.lane.b32.xlu1 %v1588_v22, %s2542_s13 }
 0x80c   :  { %1629 = vrot.lane.b32.xlu1 %v1587_v27, %s2542_s13 }
 0x85b   :  { %v1573_v56 = vpop.permute.xlu1 %1572 }
 0x85c   :  { %v1585_v30 = vmul.f32 %v2504_v7, %v1573_v56  ;;  %v1796_v7 = vld [vmem:[%s3358_s6 + $0x30] sm:$0xff] }
 0x85f   :  { %v1578_v2 = vpop.permute.xlu0 %1577 }
 0x860   :  { %v1586_v5 = vmul.f32 %v2505_v31, %v1578_v2  ;;  %v1794_v31 = vld [vmem:[%s3358_s6 + $0x20] sm:$0xff] }
 0x863   :  { %v1563_v4 = vpop.permute.xlu0 %1562  ;;  %v1568_v55 = vpop.permute.xlu1 %1567 }
 0x864   :  { %v1583_v3 = vmul.f32 %v2502_v0, %v1563_v4  ;;  %v1584_v29 = vmul.f32 %v2503_v6, %v1568_v55  ;;  %v1802_v4 = vld [vmem:[%s3358_s6 + $0x60] sm:$0xff]  ;;  %v1801_v0 = vld [vmem:[%s3358_s6 + $0x58] sm:$0xff]  ;;  %v1799_v55 = vld [vmem:[%s3358_s6 + $0x48] sm:$0xff] }
 0x865   :  { %v1798_v6 = vld [vmem:[%s3358_s6 + $0x40] sm:$0xff] }
 0x866   :  { %1607 = vrot.lane.b32.xlu0 %v1583_v3, %s2543_s15  ;;  %v1800_v3 = vld [vmem:[%s3358_s6 + $0x50] sm:$0xff] }
 0x867   :  { %v1558_v32 = vpop.permute.xlu1 %1557  ;;  %v1553_v35 = vpop.permute.xlu0 %1552 }
 0x868   :  { %v1582_v34 = vmul.f32 %v2506_v33, %v1558_v32  ;;  %v1581_v37 = vmul.f32 %v2507_v36, %v1553_v35  ;;  %v1792_v32 = vld [vmem:[%s3358_s6 + $0x10] sm:$0xff]  ;;  %v1790_v36 = vld [vmem:[%s3358_s6] sm:$0xff] }
 0x86a   :  { %1609 = vrot.lane.b32.xlu0 %v1584_v29, %s2543_s15  ;;  %v1797_v29 = vld [vmem:[%s3358_s6 + $0x38] sm:$0xff] }
 0x86b   :  { %v1548_v38 = vpop.permute.xlu1 %1547 }
 0x86c   :  { %v1580_v40 = vmul.f32 %v2508_v39, %v1548_v38 }
 0x86e   :  { %1611 = vrot.lane.b32.xlu0 %v1585_v30, %s2543_s15  ;;  %v1795_v30 = vld [vmem:[%s3358_s6 + $0x28] sm:$0xff] }
 0x86f   :  { %v1640_v42 = vpop.permute.xlu1 %1639 }
 0x872   :  { %1613 = vrot.lane.b32.xlu0 %v1586_v5, %s2543_s15  ;;  %v1793_v5 = vld [vmem:[%s3358_s6 + $0x18] sm:$0xff] }
 0x873   :  { %v1638_v43 = vpop.permute.xlu1 %1637 }
 0x876   :  { %1605 = vrot.lane.b32.xlu0 %v1582_v34, %s2543_s15  ;;  %v1791_v34 = vld [vmem:[%s3358_s6 + $0x8] sm:$0xff]  ;;  %s2550_s6 = smov [#allocation2]  }
 0x877   :  { %v1636_v46 = vpop.permute.xlu1 %1635 }
 0x87a   :  { %1603 = vrot.lane.b32.xlu0 %v1581_v37, %s2543_s15 }
 0x87b   :  { %v1642_v54 = vpop.permute.xlu1 %1641 }
 0x87e   :  { %1601 = vrot.lane.b32.xlu0 %v1580_v40, %s2543_s15 }
 0x87f   :  { %v1634_v60 = vpop.permute.xlu1 %1633 }
 0x882   :  { %1740 = vrot.lane.b32.xlu0 %v3252_v41, %s2544_s29 }
 0x883   :  { %v1632_v11 = vpop.permute.xlu1 %1631 }
 0x886   :  { %1750 = vrot.lane.b32.xlu0 %v3252_v41, %s2545_s8 }
 0x887   :  { %v1630_v18 = vpop.permute.xlu1 %1629 }
 0x8d8   :  { %v1608_v44 = vpop.permute.xlu0 %1607 }
 0x8d9   :  { %v1654_v45 = vsel %vm1650_vm8, %v3192_v53, %v1608_v44  ;;  %v1543_v53 = vld [vmem:[%s3357_s5] sm:$0xf]  ;;  %s2547_s5 = smov 1  }
 0x8da   :  { %v1662_v48 = vsel %vm1658_vm11, %v1654_v45, %v1636_v46 }
 0x8dc   :  { %v1610_v50 = vpop.permute.xlu0 %1609 }
 0x8dd   :  { %v1655_v8 = vsel %vm1650_vm8, %v3194_v57, %v1610_v50 }
 0x8de   :  { %v1663_v12 = vsel %vm1658_vm11, %v1655_v8, %v1638_v43 }
 0x8e0   :  { %v1612_v58 = vpop.permute.xlu0 %1611 }
 0x8e1   :  { %v1656_v62 = vsel %vm1650_vm8, %v3186_v13, %v1612_v58 }
 0x8e2   :  { %v1664_v10 = vsel %vm1658_vm11, %v1656_v62, %v1640_v42 }
 0x8e4   :  { %v1614_v52 = vpop.permute.xlu0 %1613 }
 0x8e5   :  { %v1657_v63 = vsel %vm1650_vm8, %v3189_v47, %v1614_v52 }
 0x8e6   :  { %v1665_v1 = vsel %vm1658_vm11, %v1657_v63, %v1642_v54  ;;  %v1805_v54 = vsub.s32 4, %v2725_v28 }
 0x8e7   :  { %2381 = vmatpush3.msra.mxu0 %v1665_v1 }
 0x8e8   :  { %v1606_v9 = vpop.permute.xlu0 %1605  ;;  %2382 = vmatprep.subr.mxu0 %v2533_v14  ;;  %v1806_v58 = vrot.slane %v1802_v4, %v1805_v54 }
 0x8e9   :  { %2383 = vmatpush3.msra.mxu0 %v1664_v10  ;;  %v1653_v13 = vsel %vm1650_vm8, %v3200_v61, %v1606_v9 }
 0x8ea   :  { %2384 = vmatprep.subr.mxu0 %v2533_v14  ;;  %v1661_v47 = vsel %vm1658_vm11, %v1653_v13, %v1634_v60 }
 0x8eb   :  { %2385 = vmatpush3.msra.mxu0 %v1663_v12 }
 0x8ec   :  { %v1604_v15 = vpop.permute.xlu0 %1603  ;;  %2386 = vmatprep.subr.mxu0 %v2533_v14 }
 0x8ed   :  { %v1652_v16 = vsel %vm1650_vm8, %v3198_v19, %v1604_v15  ;;  %2387 = vmatpush3.msra.mxu0 %v1662_v48 }
 0x8ee   :  { %2388 = vmatprep.subr.mxu0 %v2533_v14  ;;  %v1660_v49 = vsel %vm1658_vm11, %v1652_v16, %v1632_v11 }
 0x8ef   :  { %2389 = vmatpush3.msra.mxu0 %v1661_v47 }
 0x8f0   :  { %v1602_v17 = vpop.permute.xlu0 %1601  ;;  %2390 = vmatprep.subr.mxu0 %v2533_v14 }
 0x8f1   :  { %v1651_v51 = vsel %vm1650_vm8, %v3204_v20, %v1602_v17  ;;  %2391 = vmatpush3.msra.mxu0 %v1660_v49 }
 0x8f2   :  { %2392 = vmatprep.subr.mxu0 %v2533_v14  ;;  %v1659_v57 = vsel %vm1658_vm11, %v1651_v51, %v1630_v18 }
 0x8f3   :  { %2393 = vmatpush3.msra.mxu0 %v1659_v57 }
 0x8f4   :  { %2395 = vmatmul.mubr.msk.f32.vlgmr.msra.gmra.mxu0 %vm377_vm9, %v1543_v53  ;;  %v1741_v19 = vpop.permute.xlu0 %1740  ;;  %vm1811_vm9 = vcmask 1043456  }
 0x8f5   :  { %2398 = vmatpush3.msk.msra.mxu1 %vm1811_vm9, %v1802_v4 }
 0x8f6   :  { %2399 = vmatprep.subr.mxu1 %v2533_v14 }
 0x8f7   :  { %2400 = vmatpush3.msra.mxu1 %v1801_v0 }
 0x8f8   :  { %v1751_v25 = vpop.permute.xlu0 %1750  ;;  %2401 = vmatprep.subr.mxu1 %v2533_v14 }
 0x8f9   :  { %2402 = vmatpush3.msra.mxu1 %v1800_v3 }
 0x8fa   :  { %2403 = vmatprep.subr.mxu1 %v2533_v14 }
 0x8fb   :  { %2404 = vmatpush3.msra.mxu1 %v1799_v55 }
 0x8fc   :  { %2405 = vmatprep.subr.mxu1 %v2533_v14 }
 0x8fd   :  { %2406 = vmatpush3.msra.mxu1 %v1798_v6 }
 0x8fe   :  { %2407 = vmatprep.subr.mxu1 %v2533_v14 }
 0x8ff   :  { %2408 = vmatpush3.msra.mxu1 %v1797_v29 }
 0x900   :  { %2409 = vmatprep.subr.mxu1 %v2533_v14 }
 0x901   :  { %2410 = vmatpush3.msra.mxu1 %v1796_v7 }
 0x902   :  { %2411 = vmatprep.subr.mxu1 %v2533_v14 }
 0x903   :  { %2412 = vmatpush3.msra.mxu1 %v1795_v30 }
 0x904   :  { %2413 = vmatprep.subr.mxu1 %v2533_v14 }
 0x905   :  { %2414 = vmatpush3.msra.mxu1 %v1794_v31 }
 0x906   :  { %2415 = vmatprep.subr.mxu1 %v2533_v14 }
 0x907   :  { %2416 = vmatpush3.msra.mxu1 %v1793_v5 }
 0x908   :  { %2417 = vmatprep.subr.mxu1 %v2533_v14 }
 0x909   :  { %2418 = vmatpush3.msra.mxu1 %v1792_v32 }
 0x90a   :  { %2419 = vmatprep.subr.mxu1 %v2533_v14 }
 0x90b   :  { %2420 = vmatpush3.msra.mxu1 %v1791_v34 }
 0x90c   :  { %2421 = vmatprep.subr.mxu1 %v2533_v14 }
 0x90d   :  { %2422 = vmatpush3.msra.mxu1 %v1790_v36 }
 0x9b4   :  { %v3287_v61 = vpop.f32.mrf.mxu0 }
 0x9b5   :  { %v1743_v20 = vmul.f32 %v1741_v19, %v3287_v61 }
 0x9b6   :  { %v2396_v21 = vpop.f32.mrf.mxu0 }
 0x9b7   :  { %v1744_v23 = vmul.f32 %v1743_v20, %v3287_v61 }
 0x9b9   :  { %1746 = vrot.lane.b32.xlu1 %v1744_v23, %s2542_s13 }
 0x9bd   :  { %1756 = vperm.xlu1 %2498, %v1743_v20  }
 0xa2b   :  { %v1747_v24 = vpop.permute.xlu1 %1746 }
 0xa2c   :  { %v1749_v26 = vsub.f32 %v3287_v61, %v1747_v24 }
 0xa2e   :  { %v1753_v22 = vmul.f32 %v1751_v25, %v1749_v26 }
 0xa30   :  { %v1765_v27 = vadd.f32 1e-10, %v1753_v22 }
 0xa32   :  { %1768 = vperm.xlu0 %2499, %v1765_v27  }
 0xa38   :  { %v1757_v2 = vpop.permute.xlu1 %1756 }
 0xa39   :  { %v1759_v56 = vmul.f32 %v1757_v2, %v3252_v41 }
 0xa3b   :  { %1761 = vrot.lane.b32.xlu1 %v1759_v56, %s2547_s5  ;;  %s2549_s5 = smov 49  }
 0xa3f   :  { %1773 = vrot.lane.b32.xlu1 %v3252_v41, %s2548_s9  ;;  %s1893_s9 = sshll.u32 %s2550_s6, 4  ;;  %s1894_s9 = int_to_ptr.vmem [resolvable:$true] %s1893_s9 }
 0xa40   :  { %p2514_p1 = scmp.lt.s32.totalorder %s1894_s9, %s1894_s9 }
 0xaad   :  { %v1769_v33 = vpop.permute.xlu0 %1768  ;;  %v1762_v35 = vpop.permute.xlu1 %1761 }
 0xaae   :  { %2500 = vrcp.f32 %v1769_v33  ;;  %v1764_v37 = vsub.f32 %v3287_v61, %v1762_v35 }
 0xab1   :  { %v1774_v39 = vpop.permute.xlu1 %1773 }
 0xabb   :  { %v2501_v38 = vpop.eup %2500 }
 0xabc   :  { %v1772_v40 = vmul.f32 %v2501_v38, %v1764_v37 }
 0xabe   :  { %v1776_v41 = vadd.f32 %v1774_v39, %v1772_v40 }
 0xac0   :  { %vm1777_vm12 = vcmp.gt.f32.partialorder %v1776_v41, 0.0  ;;  %v1778_v42 = vmul.f32 0.01, %v1776_v41 }
 0xac2   :  { %v1779_v43 = vsel %vm1777_vm12, %v1776_v41, %v1778_v42 }
 0xac3   :  { %1781 = vrot.lane.b32.xlu0 %v1779_v43, %s2541_s3  ;;  %v1784_v44 = vrot.slane %v1779_v43, 2  ;;  %s2509_s3 = scalar_lea.vmem %s1894_s9, 32 }
 0xac4   :  { %p2510_p0 = scmp.ne.s32.totalorder %s1894_s9, %s2509_s3  ;;  %p2515_p2 = scmp.lt.s32.totalorder %s2509_s3, %s2509_s3 }
 0xac5   :  { %1785 = vrot.lane.b32.xlu1 %v1784_v44, %s2549_s5 }
 0xac6   :  { %p2516_p3 = por %p2515_p2, %p2514_p1 }
 0xac8   :  { %p2517_p4 = pnand %p2516_p3, %p2510_p0 }
 0xb35   :  { %v1782_v14 = vpop.permute.xlu0 %1781 }
 0xb37   :  { %v1786_v46 = vpop.permute.xlu1 %1785 }
 0xb38   :  { %v1789_v50 = vsel %vm1788_vm13, %v1782_v14, %v1786_v46 }
 0xb39   :  { %2424 = vmatmul.mubr.msk.f32.vlgmr.msra.gmra.mxu1 %vm1807_vm14, %v1789_v50 }
 0xbf9   :  { %v1881_v52 = vpop.f32.mrf.mxu1 }
 0xbfa   :  { %v1882_v60 = vadd.f32 %v1881_v52, %v1806_v58 }
 0xbfb   :  { %v2425_v62 = vpop.f32.mrf.mxu1 }
 0xbfc   :  { %1886 = vst.msk [vmem:[#allocation2] sm:$0x3] %vm1885_vm15, %v1882_v60 }
 0xbfd   :  { %2520 = shalt.err (!%p2517_p4)
}
 0xbfe   :  { %1896 = dma.vmem_to_hbm [thread:$0]  %s1894_s9, 32, %s3359_s7, [#allocation3]  }
 0xbff   :  { %2529 = dma.done.wait [#allocation3], 32  }
 0xc00   :  { %2530 = vsyncadd [#allocation3], 4294967264 }
 0xc01   :  { %1900 = vsyncpa [#allocation3], 1 }

</bundles_post_ra>
